<compile_context>
chip_gen: v7x
topology: tpu7x:2x2x1
jax: 0.10.0
libtpu: 0.0.40
codegen_flags: <defaults>
</compile_context>

<pallas_src>
import functools

import numpy as np
import jax
import jax.numpy as jnp
from jax.experimental import pallas as pl
from jax.experimental.pallas import tpu as pltpu

_HALO_ROWS = 8  # row granularity of the clamped halo blocks (keeps blocks 8-aligned)


def _vmem_budget():
    """Generation-aware scoped-VMEM limit and per-step tile budget."""
    cap = 64 * 1024 * 1024
    try:
        cap = int(getattr(pltpu.get_tpu_info(), "vmem_capacity_bytes", cap))
    except Exception:
        pass
    if cap >= 100 * 1024 * 1024:                # v5e / v6e: 128 MiB physical VMEM
        return 96 * 1024 * 1024, 20 * 1024 * 1024
    return 48 * 1024 * 1024, 12 * 1024 * 1024   # v7x: 64 MiB physical VMEM


_VMEM_LIMIT_BYTES, _TILE_BUDGET_BYTES = _vmem_budget()


def _round8(n):
    return ((n + 7) // 8) * 8


def _lanes(n):
    return ((n + 127) // 128) * 128


# ----------------------------------------------------------------------------
# Weight pre-packing (done once, at parameter-prep time).
# ----------------------------------------------------------------------------
def _banded_weight(w, W):
    """(ks, ks, Cin, Cout) HWIO conv weight -> (ks, W*Cin, W*Cout) bf16 banded
    matrix so the kernel's matmul consumes/produces lane-dense (rows, W*C)
    activations directly (the conv along W, incl. 'same' zero padding, is
    encoded in the band structure)."""
    w = np.asarray(w, np.float32)
    ks, _, cin, cout = w.shape
    pad = ks // 2
    bw = np.zeros((ks, W * cin, W * cout), np.float32)
    for dy in range(ks):
        for dx in range(ks):
            for xo in range(W):
                xi = xo + dx - pad
                if 0 <= xi < W:
                    bw[dy, xi * cin:(xi + 1) * cin, xo * cout:(xo + 1) * cout] = w[dy, dx]
    return jnp.asarray(bw, jnp.bfloat16)


def make_stage(w, b, W):
    """Pre-pack one conv's parameters into the MXU-ready lane-dense layout.

    TODO(synk): loading real PyTorch checkpoints additionally needs an
    OIHW -> HWIO permutation before calling this.
    """
    cout = int(w.shape[3])
    return {
        "bw": _banded_weight(w, W),                                        # (ks, W*Cin, W*Cout) bf16
        "bias": jnp.tile(jnp.asarray(b, jnp.float32), W).reshape(1, W * cout),  # (1, W*Cout) f32
    }


# ----------------------------------------------------------------------------
# Tile-size selection (models lane-padded VMEM footprint).
# ----------------------------------------------------------------------------
def _step_vmem_bytes(th, use_halo, W, dims, has_extra):
    T = sum(ks // 2 for ks, _, _ in dims)
    cin0 = dims[0][1]
    cout_last = dims[-1][2]
    b = 2 * _round8(th) * _lanes(W * cin0) * 2                   # mid input block (bf16, dbl-buffered)
    if use_halo:
        b += 2 * 2 * _HALO_ROWS * _lanes(W * cin0) * 2           # top/bottom halo blocks
    b += 2 * _round8(th) * _lanes(W * cout_last) * 2             # output block
    if has_extra:
        b += 2 * _round8(th) * _lanes(W * cout_last) * 2         # fused residual / gate block
    rows = th + 2 * T
    b += _round8(rows) * _lanes(W * cin0) * 2                    # assembled halo'd input temp
    for ks, ci, co in dims:
        b += 2 * ks * _round8(W * ci) * _lanes(W * co) * 2       # banded weights (bf16)
        b += 2 * 8 * _lanes(W * co) * 4                          # bias
        rows -= 2 * (ks // 2)
        b += _round8(rows) * _lanes(W * co) * (4 + 2)            # f32 acc + bf16 copy
    return b


def _pick_tile_h(H, N, W, dims, has_extra):
    cands = [d for d in range(_HALO_ROWS, H, _HALO_ROWS) if H % d == 0]
    cands.sort(reverse=True)
    cands = [H] + cands
    if N < 2 and len(cands) > 1:
        # v7x megacore: guarantee >= 2 grid steps so both TensorCores do work.
        cands = [d for d in cands if d < H]
    for th in cands:
        if _step_vmem_bytes(th, th < H, W, dims, has_extra) <= _TILE_BUDGET_BYTES:
            return th
    # TODO(synk): if even the smallest tile is over budget (very large W), a
    # width-tiled banded layout is required; fall back to the smallest tile.
    return cands[-1]


# ----------------------------------------------------------------------------
# Fused conv-chain kernel.
# One grid step = (batch n, row tile i).  Inside: assemble the halo'd bf16 row
# window, then run every conv stage back-to-back (ks accumulating MXU dots per
# stage, f32 accumulation, fused bias / activation), keeping intermediates in
# VMEM, then apply the fused residual-add / sigmoid-gate epilogue and store one
# lane-dense bf16 block.
# ----------------------------------------------------------------------------
def _chain_kernel(*refs, th, W, H, T, use_halo, stages, epilogue, ext_extra):
    n_st = len(stages)
    idx = 0
    if use_halo:
        top_ref, mid_ref, bot_ref = refs[0], refs[1], refs[2]
        idx = 3
    else:
        mid_ref = refs[0]
        idx = 1
    w_refs = refs[idx:idx + n_st]
    idx += n_st
    b_refs = refs[idx:idx + n_st]
    idx += n_st
    extra_ref = refs[idx] if ext_extra else None
    o_ref = refs[-1]

    i = pl.program_id(1)
    mid = mid_ref[0]                                   # (th, W*Cin) bf16
    if T > 0:
        if use_halo:
            top = top_ref[0][_HALO_ROWS - T:, :]
            bot = bot_ref[0][:T, :]
        else:
            top = jnp.zeros((T, mid.shape[1]), mid.dtype)
            bot = jnp.zeros((T, mid.shape[1]), mid.dtype)
        cur = jnp.concatenate([top, mid, bot], axis=0)  # (th + 2T, W*Cin)
    else:
        cur = mid

    h = T
    gy0 = i * th - T                                    # global image row of cur[0]
    for s, (ks, cin, cout, act) in enumerate(stages):
        rows = th + 2 * h
        if h > 0:
            # zero rows that fall outside the image ('same' padding in H,
            # also zeroes the clamped boundary halo fetch).
            gy = gy0 + jax.lax.broadcasted_iota(jnp.int32, (rows, 1), 0)
            cur = jnp.where((gy >= 0) & (gy < H), cur, jnp.zeros_like(cur))
        pad = ks // 2
        out_rows = rows - 2 * pad
        acc = jnp.zeros((out_rows, W * cout), jnp.float32)
        for dy in range(ks):
            acc = acc + jnp.dot(cur[dy:dy + out_rows, :], w_refs[s][dy],
                                preferred_element_type=jnp.float32)
        acc = acc + b_refs[s][...]
        if act == "relu":
            acc = jnp.maximum(acc, 0.0)
        elif act == "gelu":
            # TODO(synk): PyTorch nn.GELU defaults to the exact erf form; tanh approx used.
            acc = jax.nn.gelu(acc, approximate=True)
        elif act == "sigmoid":
            acc = jax.nn.sigmoid(acc)
        h -= pad
        gy0 = gy0 + pad
        cur = acc.astype(jnp.bfloat16) if s + 1 < n_st else acc

    if epilogue is not None:
        base = (extra_ref[0] if ext_extra else mid).astype(jnp.float32)
        cur = cur + base if epilogue == "add" else cur * base
    o_ref[0] = cur.astype(o_ref.dtype)


def conv_chain(x, stages, *, acts, W, H, epilogue=None, extra=None, tile_h=None):
    """Run a fused chain of 'same' convs on a lane-dense (N, H, W*Cin) bf16 tensor.

    stages : list of {"bw": (ks, W*Cin_s, W*Cout_s) bf16, "bias": (1, W*Cout_s) f32}
    acts   : tuple of None|'relu'|'gelu'|'sigmoid' per stage.
    epilogue: None | 'add' | 'mul'.  extra=None means the epilogue operand is the
    chain's own input (self-residual / self-gate); otherwise a (N, H, W*Cout) array.
    Returns (N, H, W*Cout_last) bf16.
    """
    if epilogue is None:
        assert extra is None
    assert len(acts) == len(stages)
    x = x.astype(jnp.bfloat16)
    N, H_, WCin = x.shape
    assert H_ == H

    dims = []
    for st in stages:
        ks, kin, kout = st["bw"].shape
        dims.append((int(ks), int(kin) // W, int(kout) // W))
    cin0, cout_last = dims[0][1], dims[-1][2]
    assert WCin == W * cin0
    if epilogue is not None and extra is None:
        assert cin0 == cout_last, "self epilogue needs matching channel counts"
    T = sum(ks // 2 for ks, _, _ in dims)
    assert T <= _HALO_ROWS

    th = tile_h if tile_h is not None else _pick_tile_h(H, N, W, dims, extra is not None)
    assert H % th == 0 and (th == H or th % _HALO_ROWS == 0), (H, th)
    use_halo = (T > 0) and (th < H)

    WCout = W * cout_last
    grid = (N, H // th)

    in_specs = []
    args = []
    if use_halo:
        tb = th // _HALO_ROWS
        nb = H // _HALO_ROWS
        in_specs.append(pl.BlockSpec(
            (1, _HALO_ROWS, WCin),
            lambda n, i, tb=tb: (n, jnp.maximum(i * tb - 1, 0), 0)))
        in_specs.append(pl.BlockSpec((1, th, WCin), lambda n, i: (n, i, 0)))
        in_specs.append(pl.BlockSpec(
            (1, _HALO_ROWS, WCin),
            lambda n, i, tb=tb, nb=nb: (n, jnp.minimum((i + 1) * tb, nb - 1), 0)))
        args += [x, x, x]
    else:
        in_specs.append(pl.BlockSpec((1, th, WCin), lambda n, i: (n, i, 0)))
        args.append(x)

    for st in stages:
        ks_, kin_, kout_ = (int(d) for d in st["bw"].shape)
        in_specs.append(pl.BlockSpec((ks_, kin_, kout_), lambda n, i: (0, 0, 0)))
        args.append(st["bw"])
    for st in stages:
        in_specs.append(pl.BlockSpec((1, int(st["bias"].shape[1])), lambda n, i: (0, 0)))
        args.append(st["bias"])
    if extra is not None:
        assert extra.shape == (N, H, WCout)
        in_specs.append(pl.BlockSpec((1, th, WCout), lambda n, i: (n, i, 0)))
        args.append(extra.astype(jnp.bfloat16))

    stage_meta = tuple((d[0], d[1], d[2], a) for d, a in zip(dims, acts))
    kern = functools.partial(_chain_kernel, th=th, W=W, H=H, T=T, use_halo=use_halo,
                             stages=stage_meta, epilogue=epilogue,
                             ext_extra=extra is not None)
    return pl.pallas_call(
        kern,
        out_shape=jax.ShapeDtypeStruct((N, H, WCout), jnp.bfloat16),
        grid=grid,
        in_specs=in_specs,
        out_specs=pl.BlockSpec((1, th, WCout), lambda n, i: (n, i, 0)),
        compiler_params=pltpu.CompilerParams(
            dimension_semantics=("parallel", "parallel"),
            vmem_limit_bytes=_VMEM_LIMIT_BYTES),
    )(*args)


# ----------------------------------------------------------------------------
# Model forward (glue around the fused conv-chain kernels).
# ----------------------------------------------------------------------------
def omnisr_forward(x_nchw, params, *, window_size, up_scale):
    N, C, Hin, Win = x_nchw.shape
    # check_image_size: pad spatial dims to a multiple of window_size
    mod_h = (window_size - Hin % window_size) % window_size
    mod_w = (window_size - Win % window_size) % window_size
    xp = jnp.pad(x_nchw, ((0, 0), (0, 0), (0, mod_h), (0, mod_w)))
    H, W = Hin + mod_h, Win + mod_w

    # NCHW -> lane-dense (N, H, W*C) bf16 activations.
    x = jnp.transpose(xp, (0, 2, 3, 1)).reshape(N, H, W * C).astype(jnp.bfloat16)
    assert params["input"]["bw"].shape[1] == W * C, "params packed for a different width"

    residual = conv_chain(x, [params["input"]], acts=(None,), W=W, H=H)
    out = residual
    for g in params["groups"]:
        # TODO(synk): the real OSA_Block (window/grid self-attention) and full ESA
        # (stride-2 conv + max_pool(7,3) + bilinear branch) are not part of the
        # reference snippet; each is approximated by fused conv chains.
        gin = out
        for (c1, c2) in g["blocks"]:
            out = conv_chain(out, [c1, c2], acts=("gelu", None), W=W, H=H,
                             epilogue="add")                        # fused c1+GELU+c2 + residual
        out = conv_chain(out, [g["tail"]], acts=(None,), W=W, H=H,
                         epilogue="add", extra=gin)                 # fused group residual
        out = conv_chain(out, list(g["esa"]), acts=(None, "relu", "sigmoid"),
                         W=W, H=H, epilogue="mul")                  # fused ESA chain + gate
    out = conv_chain(out, [params["output"]], acts=(None,), W=W, H=H,
                     epilogue="add", extra=residual)
    up = conv_chain(out, [params["up"]], acts=(None,), W=W, H=H)    # lane-dense (N, H, W*Cup)

    # pixel shuffle + crop on the final (small) tensor only.
    r = up_scale
    cup = up.shape[-1] // W
    c_out = cup // (r * r)
    y = up.astype(jnp.float32).reshape(N, H, W, c_out, r, r)
    y = y.transpose(0, 1, 4, 2, 5, 3).reshape(N, H * r, W * r, c_out)
    y = jnp.transpose(y, (0, 3, 1, 2))                              # NHWC -> NCHW
    return y[:, :, :Hin * r, :Win * r]


# ----------------------------------------------------------------------------
# Pure-JAX (XLA) reference of the same simplified architecture, for checking.
# ----------------------------------------------------------------------------
def _conv_ref(x_nhwc, w, b, act=None):
    y = jax.lax.conv_general_dilated(
        x_nhwc, w, window_strides=(1, 1), padding="SAME",
        dimension_numbers=("NHWC", "HWIO", "NHWC")) + b
    if act == "relu":
        y = jnp.maximum(y, 0.0)
    elif act == "gelu":
        y = jax.nn.gelu(y, approximate=True)
    elif act == "sigmoid":
        y = jax.nn.sigmoid(y)
    return y


def _forward_ref(x_nchw, raw, *, window_size, up_scale):
    N, C, Hin, Win = x_nchw.shape
    mod_h = (window_size - Hin % window_size) % window_size
    mod_w = (window_size - Win % window_size) % window_size
    x = jnp.pad(x_nchw, ((0, 0), (0, 0), (0, mod_h), (0, mod_w)))
    x = jnp.transpose(x, (0, 2, 3, 1))
    residual = _conv_ref(x, *raw["input"])
    out = residual
    for g in raw["groups"]:
        gin = out
        for (c1, c2) in g["blocks"]:
            out = _conv_ref(_conv_ref(out, *c1, act="gelu"), *c2) + out
        out = _conv_ref(out, *g["tail"]) + gin
        m = _conv_ref(_conv_ref(_conv_ref(out, *g["esa"][0]), *g["esa"][1], act="relu"),
                      *g["esa"][2], act="sigmoid")
        out = out * m
    out = _conv_ref(out, *raw["output"]) + residual
    up = _conv_ref(out, *raw["up"])
    r = up_scale
    N_, Hp, Wp, cup = up.shape
    c_out = cup // (r * r)
    y = up.reshape(N_, Hp, Wp, c_out, r, r).transpose(0, 1, 4, 2, 5, 3)
    y = y.reshape(N_, Hp * r, Wp * r, c_out)
    y = jnp.transpose(y, (0, 3, 1, 2))
    return y[:, :, :Hin * r, :Win * r]


# ----------------------------------------------------------------------------
# Deterministic parameter init (shapes follow the PyTorch module's __init__).
# Weights are pre-packed once into the banded bf16 layout for width W.
# ----------------------------------------------------------------------------
def init_params(key, num_in_ch, num_out_ch, num_feat, res_num, block_num, up_scale, W):
    def conv(k, ks, cin, cout):
        kw, kb = jax.random.split(k)
        w = jax.random.normal(kw, (ks, ks, cin, cout), jnp.float32) * 0.05
        b = jax.random.normal(kb, (cout,), jnp.float32) * 0.05
        return make_stage(w, b, W), (w, b)

    keys = iter(jax.random.split(key, 256))
    esa_ch = max(num_feat // 4, 16)
    p_in, r_in = conv(next(keys), 3, num_in_ch, num_feat)
    p_out, r_out = conv(next(keys), 3, num_feat, num_feat)
    p_up, r_up = conv(next(keys), 3, num_feat, num_out_ch * up_scale * up_scale)
    params = {"input": p_in, "output": p_out, "up": p_up, "groups": []}
    raw = {"input": r_in, "output": r_out, "up": r_up, "groups": []}
    for _ in range(res_num):
        gp, gr = {"blocks": []}, {"blocks": []}
        for _ in range(block_num):
            p1, r1 = conv(next(keys), 3, num_feat, num_feat)
            p2, r2 = conv(next(keys), 3, num_feat, num_feat)
            gp["blocks"].append((p1, p2))
            gr["blocks"].append((r1, r2))
        gp["tail"], gr["tail"] = conv(next(keys), 1, num_feat, num_feat)
        e1p, e1r = conv(next(keys), 1, num_feat, esa_ch)
        e2p, e2r = conv(next(keys), 3, esa_ch, esa_ch)
        e3p, e3r = conv(next(keys), 1, esa_ch, num_feat)
        gp["esa"], gr["esa"] = (e1p, e2p, e3p), (e1r, e2r, e3r)
        params["groups"].append(gp)
        raw["groups"].append(gr)
    return params, raw


if __name__ == "__main__":
    num_in_ch, num_out_ch, num_feat = 3, 3, 32
    res_num, block_num, up_scale, window_size = 1, 2, 2, 8

    key = jax.random.PRNGKey(0)
    kx, kp, kc1, kc2, kc3, kc4, kc5 = jax.random.split(key, 7)

    H_in = W_in = 16
    x = jax.random.normal(kx, (2, num_in_ch, H_in, W_in), jnp.float32)   # NCHW input

    W_pad = W_in + (window_size - W_in % window_size) % window_size
    params, raw = init_params(kp, num_in_ch, num_out_ch, num_feat,
                              res_num, block_num, up_scale, W_pad)

    # --- kernel self-checks vs the XLA conv reference; tile_h=8 exercises the
    # --- halo'd row-tiling / in-kernel padding path.
    Cc = num_feat
    xc = jax.random.normal(kc1, (2, 16, 16, Cc), jnp.float32)
    w1 = jax.random.normal(kc2, (3, 3, Cc, Cc), jnp.float32) * 0.05
    b1 = jax.random.normal(kc3, (Cc,), jnp.float32) * 0.05
    w2 = jax.random.normal(kc4, (3, 3, Cc, Cc), jnp.float32) * 0.05
    b2 = jax.random.normal(kc5, (Cc,), jnp.float32) * 0.05
    xl = xc.reshape(2, 16, 16 * Cc).astype(jnp.bfloat16)

    got1 = conv_chain(xl, [make_stage(w1, b1, 16)], acts=(None,), W=16, H=16, tile_h=8)
    ref1 = _conv_ref(xc, w1, b1)
    err1 = float(jnp.max(jnp.abs(got1.astype(jnp.float32).reshape(ref1.shape) - ref1)))
    assert err1 < 7.5e-2, f"single-conv check failed: {err1}"

    got2 = conv_chain(xl, [make_stage(w1, b1, 16), make_stage(w2, b2, 16)],
                      acts=("gelu", None), W=16, H=16, epilogue="add", tile_h=8)
    ref2 = _conv_ref(_conv_ref(xc, w1, b1, act="gelu"), w2, b2) + xc
    err2 = float(jnp.max(jnp.abs(got2.astype(jnp.float32).reshape(ref2.shape) - ref2)))
    assert err2 < 1e-1, f"fused-block check failed: {err2}"

    # --- full forward
    fwd = jax.jit(functools.partial(omnisr_forward,
                                    window_size=window_size, up_scale=up_scale))
    y = fwd(x, params)
    jax.block_until_ready(y)
    assert y.shape == (2, num_out_ch, H_in * up_scale, W_in * up_scale), y.shape
    assert bool(jnp.all(jnp.isfinite(y)))

    y_ref = _forward_ref(x, raw, window_size=window_size, up_scale=up_scale)
    err = float(jnp.max(jnp.abs(y.astype(jnp.float32) - y_ref)))
    assert err < 1.5e-1, f"full-model check failed: {err}"

    print("KERNEL_OK")
</pallas_src>

<mosaic_0001>
module attributes {stable_mosaic.version = 11 : i64} {
  func.func @_chain_kernel(%arg0: i32, %arg1: i32, %arg2: memref<1x8x512xbf16, #tpu.memory_space<vmem>>, %arg3: memref<1x8x512xbf16, #tpu.memory_space<vmem>>, %arg4: memref<1x8x512xbf16, #tpu.memory_space<vmem>>, %arg5: memref<3x512x512xbf16, #tpu.memory_space<vmem>>, %arg6: memref<1x512xf32, #tpu.memory_space<vmem>>, %arg7: memref<1x8x512xbf16, #tpu.memory_space<vmem>>) attributes {dimension_semantics = [#tpu.dimension_semantics<parallel>, #tpu.dimension_semantics<parallel>], iteration_bounds = array<i64: 2, 2>, scalar_prefetch = 0 : i64, scratch_operands = 0 : i64, tpu.core_type = #tpu.core_type<tc>, window_params = [{transform_indices = @transform_0, window_bounds = array<i64: 1, 8, 512>}, {transform_indices = @transform_1, window_bounds = array<i64: 1, 8, 512>}, {transform_indices = @transform_2, window_bounds = array<i64: 1, 8, 512>}, {pipeline_mode = #tpu.pipeline_mode<synchronous>, transform_indices = @transform_3, window_bounds = array<i64: 3, 512, 512>}, {pipeline_mode = #tpu.pipeline_mode<synchronous>, transform_indices = @transform_4, window_bounds = array<i64: 1, 512>}, {transform_indices = @transform_5, window_bounds = array<i64: 1, 8, 512>}]} {
    %c0 = arith.constant 0 : index
    %c0_0 = arith.constant 0 : index
    %c0_1 = arith.constant 0 : index
    %0 = vector.load %arg3[%c0, %c0_0, %c0_1] : memref<1x8x512xbf16, #tpu.memory_space<vmem>>, vector<1x8x512xbf16>
    %1 = vector.shape_cast %0 : vector<1x8x512xbf16> to vector<8x512xbf16>
    %c0_2 = arith.constant 0 : index
    %c0_3 = arith.constant 0 : index
    %c0_4 = arith.constant 0 : index
    %2 = vector.load %arg2[%c0_2, %c0_3, %c0_4] : memref<1x8x512xbf16, #tpu.memory_space<vmem>>, vector<1x8x512xbf16>
    %3 = vector.shape_cast %2 : vector<1x8x512xbf16> to vector<8x512xbf16>
    %4 = vector.extract_strided_slice %3 {offsets = [7, 0], sizes = [1, 512], strides = [1, 1]} : vector<8x512xbf16> to vector<1x512xbf16>
    %c0_5 = arith.constant 0 : index
    %c0_6 = arith.constant 0 : index
    %c0_7 = arith.constant 0 : index
    %5 = vector.load %arg4[%c0_5, %c0_6, %c0_7] : memref<1x8x512xbf16, #tpu.memory_space<vmem>>, vector<1x8x512xbf16>
    %6 = vector.shape_cast %5 : vector<1x8x512xbf16> to vector<8x512xbf16>
    %7 = vector.extract_strided_slice %6 {offsets = [0, 0], sizes = [1, 512], strides = [1, 1]} : vector<8x512xbf16> to vector<1x512xbf16>
    %8 = tpu.concatenate %4, %1, %7 in 0 : vector<1x512xbf16>, vector<8x512xbf16>, vector<1x512xbf16> -> vector<10x512xbf16>
    %c8_i32 = arith.constant 8 : i32
    %9 = arith.muli %arg1, %c8_i32 : i32
    %c1_i32 = arith.constant 1 : i32
    %10 = arith.subi %9, %c1_i32 : i32
    %11 = tpu.iota {dimensions = array<i32: 0>} : vector<10x1xi32>
    %12 = vector.broadcast %10 : i32 to vector<10x1xi32>
    %13 = arith.addi %12, %11 : vector<10x1xi32>
    %c0_i32 = arith.constant 0 : i32
    %14 = vector.broadcast %c0_i32 : i32 to vector<10x1xi32>
    %15 = arith.cmpi sge, %13, %14 : vector<10x1xi32>
    %c16_i32 = arith.constant 16 : i32
    %16 = vector.broadcast %c16_i32 : i32 to vector<10x1xi32>
    %17 = arith.cmpi slt, %13, %16 : vector<10x1xi32>
    %18 = arith.andi %15, %17 : vector<10x1xi1>
    %cst = arith.constant 0.000000e+00 : bf16
    %19 = vector.broadcast %cst : bf16 to vector<10x512xbf16>
    %20 = vector.shape_cast %18 : vector<10x1xi1> to vector<10x1xi1>
    %21 = vector.broadcast %20 : vector<10x1xi1> to vector<10x512xi1>
    %22 = arith.select %21, %8, %19 : vector<10x512xi1>, vector<10x512xbf16>
    %cst_8 = arith.constant 0.000000e+00 : f32
    %23 = vector.broadcast %cst_8 : f32 to vector<8x512xf32>
    %24 = vector.extract_strided_slice %22 {offsets = [0, 0], sizes = [8, 512], strides = [1, 1]} : vector<10x512xbf16> to vector<8x512xbf16>
    %c0_9 = arith.constant 0 : index
    %c0_10 = arith.constant 0 : index
    %c0_11 = arith.constant 0 : index
    %25 = vector.load %arg5[%c0_9, %c0_10, %c0_11] : memref<3x512x512xbf16, #tpu.memory_space<vmem>>, vector<1x512x512xbf16>
    %26 = vector.shape_cast %25 : vector<1x512x512xbf16> to vector<512x512xbf16>
    %cst_12 = arith.constant dense<0.000000e+00> : vector<8x512xf32>
    %27 = tpu.matmul %24, %26, %cst_12 {dimension_numbers = #tpu.dot_dimension_numbers<[1], [0], [0], [1], [0, 0, 1, 1], [], []>} : vector<8x512xbf16>, vector<512x512xbf16>, vector<8x512xf32> -> vector<8x512xf32>
    %28 = arith.addf %23, %27 : vector<8x512xf32>
    %29 = vector.extract_strided_slice %22 {offsets = [1, 0], sizes = [8, 512], strides = [1, 1]} : vector<10x512xbf16> to vector<8x512xbf16>
    %c1 = arith.constant 1 : index
    %c0_13 = arith.constant 0 : index
    %c0_14 = arith.constant 0 : index
    %30 = vector.load %arg5[%c1, %c0_13, %c0_14] : memref<3x512x512xbf16, #tpu.memory_space<vmem>>, vector<1x512x512xbf16>
    %31 = vector.shape_cast %30 : vector<1x512x512xbf16> to vector<512x512xbf16>
    %cst_15 = arith.constant dense<0.000000e+00> : vector<8x512xf32>
    %32 = tpu.matmul %29, %31, %cst_15 {dimension_numbers = #tpu.dot_dimension_numbers<[1], [0], [0], [1], [0, 0, 1, 1], [], []>} : vector<8x512xbf16>, vector<512x512xbf16>, vector<8x512xf32> -> vector<8x512xf32>
    %33 = arith.addf %28, %32 : vector<8x512xf32>
    %34 = vector.extract_strided_slice %22 {offsets = [2, 0], sizes = [8, 512], strides = [1, 1]} : vector<10x512xbf16> to vector<8x512xbf16>
    %c2 = arith.constant 2 : index
    %c0_16 = arith.constant 0 : index
    %c0_17 = arith.constant 0 : index
    %35 = vector.load %arg5[%c2, %c0_16, %c0_17] : memref<3x512x512xbf16, #tpu.memory_space<vmem>>, vector<1x512x512xbf16>
    %36 = vector.shape_cast %35 : vector<1x512x512xbf16> to vector<512x512xbf16>
    %cst_18 = arith.constant dense<0.000000e+00> : vector<8x512xf32>
    %37 = tpu.matmul %34, %36, %cst_18 {dimension_numbers = #tpu.dot_dimension_numbers<[1], [0], [0], [1], [0, 0, 1, 1], [], []>} : vector<8x512xbf16>, vector<512x512xbf16>, vector<8x512xf32> -> vector<8x512xf32>
    %38 = arith.addf %33, %37 : vector<8x512xf32>
    %c0_19 = arith.constant 0 : index
    %c0_20 = arith.constant 0 : index
    %39 = vector.load %arg6[%c0_19, %c0_20] : memref<1x512xf32, #tpu.memory_space<vmem>>, vector<1x512xf32>
    %40 = vector.broadcast %39 : vector<1x512xf32> to vector<8x512xf32>
    %41 = arith.addf %38, %40 : vector<8x512xf32>
    %42 = arith.truncf %41 : vector<8x512xf32> to vector<8x512xbf16>
    %c0_21 = arith.constant 0 : index
    %c0_22 = arith.constant 0 : index
    %c0_23 = arith.constant 0 : index
    %43 = vector.load %arg7[%c0_21, %c0_22, %c0_23] : memref<1x8x512xbf16, #tpu.memory_space<vmem>>, vector<1x8x512xbf16>
    %44 = vector.shape_cast %43 : vector<1x8x512xbf16> to vector<8x512xbf16>
    %45 = vector.shape_cast %42 : vector<8x512xbf16> to vector<1x8x512xbf16>
    tpu.vector_store %arg7[%c0_21, %c0_22, %c0_23], %45 {strides = array<i32>} : memref<1x8x512xbf16, #tpu.memory_space<vmem>>, vector<1x8x512xbf16>,
    return
  }
  func.func @transform_0(%arg0: i32, %arg1: i32) -> (i32, i32, i32) {
    %c1_i32 = arith.constant 1 : i32
    %0 = arith.muli %arg1, %c1_i32 : i32
    %c1_i32_0 = arith.constant 1 : i32
    %1 = arith.subi %0, %c1_i32_0 : i32
    %c0_i32 = arith.constant 0 : i32
    %2 = arith.maxsi %1, %c0_i32 : i32
    %c0_i32_1 = arith.constant 0 : i32
    %c0_i32_2 = arith.constant 0 : i32
    return %arg0, %2, %c0_i32_1 : i32, i32, i32
  }
  func.func @transform_1(%arg0: i32, %arg1: i32) -> (i32, i32, i32) {
    %c0_i32 = arith.constant 0 : i32
    %c0_i32_0 = arith.constant 0 : i32
    return %arg0, %arg1, %c0_i32 : i32, i32, i32
  }
  func.func @transform_2(%arg0: i32, %arg1: i32) -> (i32, i32, i32) {
    %c1_i32 = arith.constant 1 : i32
    %0 = arith.addi %arg1, %c1_i32 : i32
    %c1_i32_0 = arith.constant 1 : i32
    %1 = arith.muli %0, %c1_i32_0 : i32
    %c1_i32_1 = arith.constant 1 : i32
    %2 = arith.minsi %1, %c1_i32_1 : i32
    %c0_i32 = arith.constant 0 : i32
    %c0_i32_2 = arith.constant 0 : i32
    return %arg0, %2, %c0_i32 : i32, i32, i32
  }
  func.func @transform_3(%arg0: i32, %arg1: i32) -> (i32, i32, i32) {
    %c0_i32 = arith.constant 0 : i32
    %c0_i32_0 = arith.constant 0 : i32
    %c0_i32_1 = arith.constant 0 : i32
    %c0_i32_2 = arith.constant 0 : i32
    return %c0_i32, %c0_i32_0, %c0_i32_1 : i32, i32, i32
  }
  func.func @transform_4(%arg0: i32, %arg1: i32) -> (i32, i32) {
    %c0_i32 = arith.constant 0 : i32
    %c0_i32_0 = arith.constant 0 : i32
    %c0_i32_1 = arith.constant 0 : i32
    return %c0_i32, %c0_i32_0 : i32, i32
  }
  func.func @transform_5(%arg0: i32, %arg1: i32) -> (i32, i32, i32) {
    %c0_i32 = arith.constant 0 : i32
    %c0_i32_0 = arith.constant 0 : i32
    return %arg0, %arg1, %c0_i32 : i32, i32, i32
  }
}

</mosaic_0001>

<bundles_post_ra>
// kernel: tpu_custom_call.1
= control target key start
LH: loop header
LB: loop body
LE: loop exit
PB: predicated region body
PF: predicated region fallthrough
CT: control target
= control target key end

     0   :  { %s5821_s0 = inlined_call_operand.hbm [shape: bf16[2,16,512], index: 0, kind: input, shape index: {}]   ;;  %s5822_s1 = inlined_call_operand.hbm [shape: bf16[2,16,512], index: 1, kind: input, shape index: {}]   ;;  %s5823_s2 = inlined_call_operand.hbm [shape: bf16[2,16,512], index: 2, kind: input, shape index: {}]   ;;  %s5824_s3 = inlined_call_operand.hbm [shape: bf16[3,512,512], index: 3, kind: input, shape index: {}]   ;;  %s5825_s4 = inlined_call_operand.hbm [shape: f32[1,512], index: 4, kind: input, shape index: {}]   ;;  %s5826_s5 = inlined_call_operand.hbm [shape: bf16[2,16,512], index: 5, kind: output, shape index: {}]  }
   0x1   :  { %5845 = sst [smem:[#allocation24_spill]] %s5821_s0 }
   0x2   :  { %5846 = sst [smem:[#allocation25_spill]] %s5822_s1 }
   0x3   :  { %5847 = sst [smem:[#allocation26_spill]] %s5823_s2 }
   0x4   :  { %5848 = sst [smem:[#allocation27_spill]] %s5824_s3 }
   0x5   :  { %5849 = sst [smem:[#allocation28_spill]] %s5825_s4 }
   0x6   :  { %5850 = sst [smem:[#allocation29_spill]] %s5826_s5 }
   0x7   :  { %10 = vsyncpa [#allocation3], 0 }
   0x8   :  { %12 = vsyncpa [#allocation3 + $0x1], 0 }
   0x9   :  { %13 = vsyncpa [#allocation6], 0 }
   0xa   :  { %15 = vsyncpa [#allocation6 + $0x1], 0 }
   0xb   :  { %16 = vsyncpa [#allocation9], 0 }
   0xc   :  { %17 = vsyncpa [#allocation4], 0 }
   0xd   :  { %19 = vsyncpa [#allocation4 + $0x1], 0  ;;  %s5150_s18 = smov 0   ;;  %s5152_s19 = smov 0  }
   0xe   :  { %s5154_s20 = smov 0   ;;  %s5156_s21 = smov 0  }
   0xf   :  { %s5158_s22 = smov 0   ;;  %s5160_s23 = smov 0  }
  0x10   :  { %s5162_s24 = smov 0   ;;  %s5164_s25 = smov 0  }
  0x11   :  { %s5166_s26 = smov 0   ;;  %s5168_s27 = smov 0  }
  0x12   :  { %s5170_s28 = smov 0   ;;  %s5172_s29 = smov 0  }
  0x13   :  { %s5174_s30 = smov 0   ;;  %s5176_s6 = smov 0  }
  0x14 LB: > { %5851 = sst [smem:[#allocation17_spill]] %s5057_s18  ;;  %s5221_s7 = sadd.s32 4294967295, %s5109_s6   ;;  %s5109_s6 = sphi %s5176_s6, %s25_s6   ;;  %s5105_s30 = sphi %s5174_s30, %s5925_s30   ;;  %s5101_s29 = sphi %s5172_s29, %s5924_s29   ;;  %s5097_s28 = sphi %s5170_s28, %s5923_s28   ;;  %s5093_s27 = sphi %s5168_s27, %s5922_s27   ;;  %s5089_s26 = sphi %s5166_s26, %s5921_s26   ;;  %s5085_s25 = sphi %s5164_s25, %s5920_s25   ;;  %s5081_s24 = sphi %s5162_s24, %s5919_s24   ;;  %s5077_s23 = sphi %s5160_s23, %s5918_s23   ;;  %s5073_s22 = sphi %s5158_s22, %s5917_s22   ;;  %s5069_s21 = sphi %s5156_s21, %s5913_s21   ;;  %s5065_s20 = sphi %s5154_s20, %s5916_s20   ;;  %s5061_s19 = sphi %s5152_s19, %s5915_s19   ;;  %s5057_s18 = sphi %s5150_s18, %s5914_s18  }
  0x15   : > { %5852 = sst [smem:[#allocation18_spill]] %s5069_s21  ;;  %p3612_p0 = scmp.ge.s32.totalorder %s5109_s6, 1 }
  0x16   : > { %5853 = sst [smem:[#allocation19_spill]] %s5073_s22  ;;  %p5827_p1 = scmp.eq.s32.totalorder %s5221_s7, 0 }
  0x17   : > { %5854 = sst [smem:[#allocation20_spill]] %s5093_s27  ;;  %p208_p2 = scmp.lt.s32.totalorder %s5109_s6, 5 }
  0x18   : > { %5855 = sst [smem:[#allocation21_spill]] %s5097_s28  ;;  %s5111_s9 = smov [#allocation8]  }
  0x19   : > { %p5226_p3 = pnand %p3612_p0, %p208_p2  ;;  %s220_s10 = sshll.u32 %s5111_s9, 4  ;;  %s221_s10 = int_to_ptr.vmem [resolvable:$true] %s220_s10 }
  0x1a   : > { %s5859_s3 = sld [smem:[#allocation27_spill]] }
  0x1b   : > { %s5856_s8 = scalar_select %p5226_p3, 1, 0 }
  0x1c   : > { %p4069_p4 = pneg %p5226_p3 }
  0x1d   : > { %5857 = sst [smem:[#allocation22_spill]] %s5856_s8 }
  0x1e   : > { %p5234_p5 = pnand %p4069_p4, %p5827_p1 }
  0x20   : > { %s4801_s14 = scalar_lea.hbm %s5859_s3, 49152  ;;  %p5840_p7 = pneg %p5234_p5 }
  0x21   : > { %p4802_p6 = scmp.ne.s32.totalorder %s5859_s3, %s4801_s14  ;;  %p4808_p10 = scmp.lt.u32.totalorder %s4801_s14, %s5859_s3 }
  0x23   : > { %p4804_p8 = pnand %p5840_p7, %p4802_p6 }
  0x25   : > { %p4805_p9 = pneg %p4804_p8 }
  0x27   : > { %p4810_p11 = pnand %p4808_p10, %p4805_p9 }
  0x29   : > { %4813 = shalt.err (!%p4810_p11)
}
  0x2a   : > { %s4814_s12 = scalar_lea.vmem %s221_s10, 49152  ;;  %p4822_p2 = scmp.lt.s32.totalorder %s221_s10, %s221_s10 }
  0x2b   : > { %p4815_p12 = scmp.ne.s32.totalorder %s221_s10, %s4814_s12  ;;  %p4823_p4 = scmp.lt.s32.totalorder %s4814_s12, %s4814_s12 }
  0x2d   : > { %p4817_p13 = pnand %p4815_p12, %p5840_p7  ;;  %p4824_p1 = por %p4823_p4, %p4822_p2 }
  0x2f   : > { %p4818_p0 = pneg %p4817_p13 }
  0x31   : > { %p4825_p3 = pnand %p4824_p1, %p4818_p0 }
  0x33   : > { %4828 = shalt.err (!%p4825_p3)
}
  0x34   : > { %s5112_s13 = smov 256   ;;  %s5113_s14 = smov 16  }
  0x35   : > { %4072 = dma.hbm_to_vmem [thread:$0]  (!%p5234_p5), %s5859_s3, 49152, %s221_s10, [#allocation9], %s5112_s13, %s5112_s13, %s5113_s14  }
  0x36   : > { %s3609_s17 = sadd.s32 4294967294, %s5109_s6   ;;  %s34_s9 = sadd.s32 1, %s5101_s29 }
  0x37   : > { %s37_s12 = sadd.s32 1, %s5105_s30  ;;  %p35_p1 = scmp.ge.s32.totalorder %s34_s9, 2 }
  0x38   : > { %p5839_p3 = scmp.eq.s32.totalorder %s5109_s6, 0  ;;  %p87_p6 = scmp.ne.s32.totalorder %s5077_s23, %s5073_s22 }
  0x39   : > { %s5927_s9 = smov (%p35_p1, %s34_s9), 0  ;;  %s5929_s12 = smov (!%p35_p1, %s37_s12), %s5105_s30 }
  0x3a   : > { %p5276_p8 = por %p87_p6, %p5839_p3  ;;  %p93_p9 = scmp.ne.s32.totalorder %s5073_s22, %s5069_s21 }
  0x3b   : > { %p195_p10 = scmp.eq.s32.totalorder %s5221_s7, 3  ;;  %p201_p11 = scmp.eq.s32.totalorder %s3609_s17, 3 }
  0x3c   : > { %p5838_p12 = scmp.lt.s32.totalorder %s5109_s6, 4  ;;  %p5861_p13 = scmp.eq.s32.totalorder %s5221_s7, 0 }
  0x3d   : > { %p5290_p2 = por %p195_p10, %p87_p6  ;;  %p5294_p4 = por %p201_p11, %p93_p9 }
  0x3e   : > { %p5286_p0 = por %p93_p9, %p5861_p13  ;;  %s3619_s5 = sshll.u32 %s5105_s30, 3 }
  0x3f   : > { %s5864_s14 = scalar_select %p5290_p2, 1, 0 }
  0x40   : > { %s5862_s13 = scalar_select %p5286_p0, 1, 0 }
  0x41   : > { %s5865_s16 = scalar_select %p5294_p4, 1, 0 }
  0x42   : > { %5863 = sst [smem:[#allocation23_spill]] %s5862_s13  ;;  %s269_s15 = sand.u32 1, %s5109_s6  }
  0x43   : > { %s271_s3 = sand.u32 1, %s5077_s23   ;;  %s3622_s21 = sshll.u32 %s5101_s29, 2 }
  0x44   : > { %s3621_s17 = sshll.u32 %s271_s3, 4  ;;  %s279_s28 = sadd.s32 %s3622_s21, %s3619_s5 }
  0x45   : > { %s273_s27 = scalar_lea.vmem [#allocation5], %s3621_s17  ;;  %s3624_s8 = sshll.u32 %s279_s28, 6 }
  0x46   : > { %s283_s22 = sshll.u32 %s273_s27, 4  ;;  %s5866_s1 = sld [smem:[#allocation25_spill]]  ;;  %s5302_s22 = int_to_ptr.vmem [resolvable:$true] %s283_s22 }
  0x47   : > { %p5313_p1 = pnand %p5838_p12, %p5276_p8  ;;  %s5114_s5 = smov [#allocation10]  }
  0x48   : > { %s5317_s21 = sshll.u32 %s5114_s5, 4  ;;  %s5319_s27 = scalar_lea.sflag [#allocation6], %s269_s15  ;;  %s235_s21 = int_to_ptr.vmem [resolvable:$true] %s5317_s21 }
  0x49   : > { %p4831_p9 = pneg %p5313_p1 }
  0x4c   : > { %s5307_s18 = scalar_lea.hbm %s5866_s1, %s3624_s8  ;;  %s4834_s10 = scalar_lea.hbm %s5866_s1, 1024 }
  0x4d   : > { %s4829_s2 = scalar_lea.hbm %s5307_s18, 256  ;;  %p4835_p8 = scmp.lt.u32.totalorder %s5307_s18, %s5866_s1 }
  0x4e   : > { %p4830_p6 = scmp.ne.s32.totalorder %s5307_s18, %s4829_s2  ;;  %p4836_p13 = scmp.lt.u32.totalorder %s4834_s10, %s4829_s2 }
  0x4f   : > { %p4838_p3 = scmp.lt.u32.totalorder %s4829_s2, %s5307_s18 }
  0x50   : > { %p4832_p10 = pnand %p4831_p9, %p4830_p6  ;;  %p4837_p12 = por %p4836_p13, %p4835_p8 }
  0x52   : > { %p4833_p11 = pneg %p4832_p10  ;;  %p4839_p7 = por %p4838_p3, %p4837_p12 }
  0x54   : > { %p4840_p4 = pnand %p4839_p7, %p4833_p11 }
  0x56   : > { %4843 = shalt.err (!%p4840_p4)
}
  0x57   : > { %s4844_s15 = scalar_lea.vmem %s5302_s22, 256  ;;  %s5115_s5 = smov [#allocation5]  }
  0x58   : > { %p4845_p6 = scmp.ne.s32.totalorder %s5302_s22, %s4844_s15  ;;  %s4849_s28 = sshll.u32 %s5115_s5, 4  ;;  %s4850_s28 = int_to_ptr.vmem [resolvable:$false] %s4849_s28 }
  0x59   : > { %s4851_s8 = scalar_lea.vmem %s4850_s28, 512  ;;  %p4852_p0 = scmp.lt.s32.totalorder %s5302_s22, %s4850_s28 }
  0x5a   : > { %p4847_p10 = pnand %p4845_p6, %p4831_p9  ;;  %p4853_p8 = scmp.lt.s32.totalorder %s4851_s8, %s4844_s15 }
  0x5c   : > { %p4848_p2 = pneg %p4847_p10  ;;  %p4854_p13 = por %p4853_p8, %p4852_p0 }
  0x5e   : > { %p4855_p3 = pnand %p4854_p13, %p4848_p2 }
  0x60   : > { %4858 = shalt.err (!%p4855_p3)
}
  0x61   : > { %4082 = dma.hbm_to_vmem [thread:$0]  (!%p5313_p1), %s5307_s18, 256, %s5302_s22, %s5319_s27  }
  0x62   : > { %s5868_s4 = sld [smem:[#allocation28_spill]]  ;;  %p5869_p12 = pneg %p5234_p5 }
  0x68   : > { %s4859_s13 = scalar_lea.hbm %s5868_s4, 64 }
  0x69   : > { %p4860_p7 = scmp.ne.s32.totalorder %s5868_s4, %s4859_s13  ;;  %p4866_p4 = scmp.lt.u32.totalorder %s4859_s13, %s5868_s4 }
  0x6b   : > { %p4862_p0 = pnand %p4860_p7, %p5869_p12 }
  0x6d   : > { %p4863_p2 = pneg %p4862_p0 }
  0x6f   : > { %p4868_p9 = pnand %p4866_p4, %p4863_p2 }
  0x71   : > { %4871 = shalt.err (!%p4868_p9)
}
  0x72   : > { %s4872_s18 = scalar_lea.vmem %s235_s21, 64  ;;  %p5870_p11 = pmov %p5869_p12 }
  0x73   : > { %p4873_p1 = scmp.ne.s32.totalorder %s235_s21, %s4872_s18  ;;  %p4880_p8 = scmp.lt.s32.totalorder %s235_s21, %s235_s21 }
  0x74   : > { %p4881_p13 = scmp.lt.s32.totalorder %s4872_s18, %s4872_s18 }
  0x75   : > { %p4875_p6 = pnand %p4873_p1, %p5870_p11 }
  0x76   : > { %p4882_p3 = por %p4881_p13, %p4880_p8 }
  0x77   : > { %p4876_p10 = pneg %p4875_p6 }
  0x79   : > { %p4883_p7 = pnand %p4882_p3, %p4876_p10 }
  0x7b   : > { %4886 = shalt.err (!%p4883_p7)
}
  0x7c   : > { %4075 = dma.hbm_to_vmem [thread:$0]  (!%p5234_p5), %s5868_s4, 64, %s235_s21, [#allocation9]  }
  0x7d   : > { %p39_p12 = scmp.ge.s32.totalorder %s5929_s12, 2  ;;  %s52_s8 = sadd.s32 1, %s5089_s26 }
  0x7e   : > { %p59_p0 = scmp.ne.s32.totalorder %s5089_s26, %s5085_s25  ;;  %p5871_p2 = scmp.eq.s32.totalorder %s5109_s6, 0 }
  0x7f   : > { %s5931_s12 = smov (%p39_p12, %s5929_s12), 0  ;;  %p65_p5 = scmp.ne.s32.totalorder %s5085_s25, %s5081_s24 }
  0x80   : > { %s5374_s11 = ssub.s32 %s5105_s30, %s5931_s12  ;;  %p5381_p4 = por %p5871_p2, %p59_p0 }
  0x81   : > { %s5873_s21 = ssub.s32 %s5101_s29, %s5927_s9  ;;  %p5874_p9 = scmp.eq.s32.totalorder %s5221_s7, 0 }
  0x82   : > { %s77_s10 = sor.u32 %s5873_s21, %s5374_s11  ;;  %p5843_p11 = scmp.eq.s32.totalorder %s5374_s11, 0 }
  0x83   : > { %p5393_p1 = por %p5874_p9, %p65_p5  ;;  %p78_p6 = scmp.eq.s32.totalorder %s77_s10, 0 }
  0x84   : > { %s245_s17 = sand.u32 1, %s5089_s26   ;;  %s5876_s3 = sadd.s32 1, %s5077_s23 }
  0x85   : > { %s5402_s5 = scalar_select %p5843_p11, %s5089_s26, %s52_s8  }
  0x86   : > { %s5407_s15 = scalar_select %p78_p6, %s5077_s23, %s5876_s3  }
  0x87   : > { %s3616_s18 = sshll.u32 %s245_s17, 4  ;;  %s5051_s22 = sshll.u32 %s5105_s30, 9 }
  0x88   : > { %s249_s28 = scalar_lea.vmem [#allocation2], %s3616_s18  ;;  %s5877_s0 = sld [smem:[#allocation24_spill]] }
  0x89   : > { %s262_s24 = sshll.u32 %s249_s28, 4  ;;  %p5878_p10 = scmp.lt.s32.totalorder %s5109_s6, 4  ;;  %s5417_s24 = int_to_ptr.vmem [resolvable:$true] %s262_s24 }
  0x8a   : > { %s246_s10 = scalar_lea.sflag [#allocation3], %s245_s17 }
  0x8b   : > { %p5423_p8 = pnand %p5878_p10, %p5381_p4 }
  0x8d   : > { %p4889_p3 = pneg %p5423_p8 }
  0x8e   : > { %s5415_s4 = scalar_lea.hbm %s5877_s0, %s5051_s22  ;;  %s4892_s2 = scalar_lea.hbm %s5877_s0, 1024 }
  0x8f   : > { %s4887_s3 = scalar_lea.hbm %s5415_s4, 256  ;;  %p4893_p0 = scmp.lt.u32.totalorder %s5415_s4, %s5877_s0 }
  0x90   : > { %p4888_p13 = scmp.ne.s32.totalorder %s5415_s4, %s4887_s3  ;;  %p4894_p2 = scmp.lt.u32.totalorder %s4892_s2, %s4887_s3 }
  0x91   : > { %p4896_p5 = scmp.lt.u32.totalorder %s4887_s3, %s5415_s4 }
  0x92   : > { %p4890_p7 = pnand %p4889_p3, %p4888_p13  ;;  %p4895_p4 = por %p4894_p2, %p4893_p0 }
  0x94   : > { %p4891_p12 = pneg %p4890_p7  ;;  %p4897_p9 = por %p4896_p5, %p4895_p4 }
  0x96   : > { %p4898_p6 = pnand %p4897_p9, %p4891_p12 }
  0x98   : > { %4901 = shalt.err (!%p4898_p6)
}
  0x99   : > { %s4902_s17 = scalar_lea.vmem %s5417_s24, 256  ;;  %s5116_s1 = smov [#allocation2]  }
  0x9a   : > { %p4903_p10 = scmp.ne.s32.totalorder %s5417_s24, %s4902_s17  ;;  %s4907_s18 = sshll.u32 %s5116_s1, 4  ;;  %s4908_s18 = int_to_ptr.vmem [resolvable:$false] %s4907_s18 }
  0x9b   : > { %s4909_s28 = scalar_lea.vmem %s4908_s18, 512  ;;  %p4910_p11 = scmp.lt.s32.totalorder %s5417_s24, %s4908_s18 }
  0x9c   : > { %p4905_p13 = pnand %p4903_p10, %p4889_p3  ;;  %p4911_p0 = scmp.lt.s32.totalorder %s4909_s28, %s4902_s17 }
  0x9e   : > { %p4906_p7 = pneg %p4905_p13  ;;  %p4912_p2 = por %p4911_p0, %p4910_p11 }
  0xa0   : > { %p4913_p4 = pnand %p4912_p2, %p4906_p7 }
  0xa2   : > { %4916 = shalt.err (!%p4913_p4)
}
  0xa3   : > { %s5880_s3 = sld [smem:[#allocation17_spill]]  ;;  %s114_s2 = sadd.s32 1, %s5065_s20 }
  0xa4   : > { %4079 = dma.hbm_to_vmem [thread:$0]  (!%p5423_p8), %s5415_s4, 256, %s5417_s24, %s246_s10  }
  0xa5   : > { %p121_p11 = scmp.ne.s32.totalorder %s5065_s20, %s5061_s19  ;;  %s292_s21 = sand.u32 1, %s5065_s20  }
  0xa6   : > { %p5881_p12 = scmp.eq.s32.totalorder %s5109_s6, 0  ;;  %p5882_p9 = scmp.eq.s32.totalorder %s5221_s7, 0 }
  0xa7   : > { %s3625_s17 = sshll.u32 %s292_s21, 4  ;;  %p5884_p10 = scmp.eq.s32.totalorder %s5374_s11, 0 }
  0xa8   : > { %p123_p5 = por %p121_p11, %p5881_p12  ;;  %s5053_s18 = sadd.s32 256, %s5051_s22 }
  0xa9   : > { %p127_p3 = scmp.ne.s32.totalorder %s5061_s19, %s5880_s3  ;;  %s294_s28 = scalar_lea.vmem [#allocation7], %s3625_s17 }
  0xaa   : > { %s5469_s1 = scalar_select %p5884_p10, %s5065_s20, %s114_s2  }
  0xab   : > { %p5462_p6 = por %p127_p3, %p5882_p9  ;;  %s307_s0 = sshll.u32 %s294_s28, 4  ;;  %s5478_s0 = int_to_ptr.vmem [resolvable:$true] %s307_s0 }
  0xac   : > { %s5885_s10 = sld [smem:[#allocation26_spill]]  ;;  %p5886_p8 = scmp.lt.s32.totalorder %s5109_s6, 4 }
  0xad   : > { %s5883_s8 = scalar_select %p5462_p6, 1, 0 }
  0xae   : > { %p5482_p13 = pnand %p5886_p8, %p123_p5 }
  0xb0   : > { %p4919_p0 = pneg %p5482_p13 }
  0xb2   : > { %s5476_s3 = scalar_lea.hbm %s5885_s10, %s5053_s18  ;;  %s4922_s17 = scalar_lea.hbm %s5885_s10, 1024 }
  0xb3   : > { %s4917_s22 = scalar_lea.hbm %s5476_s3, 256  ;;  %p4923_p11 = scmp.lt.u32.totalorder %s5476_s3, %s5885_s10 }
  0xb4   : > { %p4918_p7 = scmp.ne.s32.totalorder %s5476_s3, %s4917_s22  ;;  %p4924_p3 = scmp.lt.u32.totalorder %s4922_s17, %s4917_s22 }
  0xb5   : > { %p4926_p5 = scmp.lt.u32.totalorder %s4917_s22, %s5476_s3 }
  0xb6   : > { %p4920_p2 = pnand %p4919_p0, %p4918_p7  ;;  %p4925_p12 = por %p4924_p3, %p4923_p11 }
  0xb8   : > { %p4921_p4 = pneg %p4920_p2  ;;  %p4927_p9 = por %p4926_p5, %p4925_p12 }
  0xba   : > { %p4928_p10 = pnand %p4927_p9, %p4921_p4 }
  0xbc   : > { %4931 = shalt.err (!%p4928_p10)
}
  0xbd   : > { %s4932_s4 = scalar_lea.vmem %s5478_s0, 256  ;;  %s5117_s24 = smov [#allocation7]  }
  0xbe   : > { %p4933_p8 = scmp.ne.s32.totalorder %s5478_s0, %s4932_s4  ;;  %s4937_s2 = sshll.u32 %s5117_s24, 4  ;;  %s4938_s2 = int_to_ptr.vmem [resolvable:$false] %s4937_s2 }
  0xbf   : > { %s4939_s21 = scalar_lea.vmem %s4938_s2, 512  ;;  %p4940_p6 = scmp.lt.s32.totalorder %s5478_s0, %s4938_s2 }
  0xc0   : > { %p4935_p7 = pnand %p4933_p8, %p4919_p0  ;;  %p4941_p11 = scmp.lt.s32.totalorder %s4939_s21, %s4932_s4 }
  0xc2   : > { %p4936_p2 = pneg %p4935_p7  ;;  %p4942_p3 = por %p4941_p11, %p4940_p6 }
  0xc4   : > { %p4943_p12 = pnand %p4942_p3, %p4936_p2 }
  0xc6   : > { %4946 = shalt.err (!%p4943_p12)
}
  0xc7   : > { %4085 = dma.hbm_to_vmem [thread:$0]  (!%p5482_p13), %s5476_s3, 256, %s5478_s0, %s5319_s27  }
  0xc8   : > { %s5888_s22 = sld [smem:[#allocation22_spill]] }
  0xce   : > { %p5889_p4 = scmp.ne.s32.totalorder %s5888_s22, 0 }
  0xcf   : > { %s318_s17 = sand.u32 (!%p5889_p4), 1, %s5085_s25  }
  0xd0   : > { %316 = sbr.rel (%p5889_p4) target bundleno = 855 (0x357), region = 40  ;;  %s5515_s18 = sshll.u32 (!%p5889_p4), %s318_s17, 4 }
  0xd1   : > { %s319_s28 = scalar_lea.sflag (!%p5889_p4), [#allocation3], %s318_s17  ;;  %s322_s4 = scalar_lea.vmem (!%p5889_p4), [#allocation2], %s5515_s18 }
  0xd7   : > { %5032 = dma.done.wait (%p5393_p1), %s319_s28, 256  }
  0xd8   : > { %5034 = vsyncadd (%p5393_p1), %s319_s28, 4294967040  ;;  %s5890_s11 = sld [smem:[#allocation19_spill]]  ;;  %s5891_s0 = sld [smem:[#allocation23_spill]] }
  0xd9   : > { %s327_s27 = sand.u32 1, %s5221_s7  }
  0xda   : > { %s328_s2 = scalar_lea.sflag [#allocation6], %s327_s27 }
  0xde   : > { %s329_s3 = sand.u32 1, %s5890_s11   ;;  %p5892_p6 = scmp.ne.s32.totalorder %s5891_s0, 0 }
  0xdf   : > { %s5526_s24 = sshll.u32 %s329_s3, 4 }
  0xe0   : > { %s331_s21 = scalar_lea.vmem [#allocation5], %s5526_s24 }
  0xe1   : > { %5036 = dma.done.wait (%p5892_p6), %s328_s2, 256  }
  0xe2   : > { %5038 = vsyncadd (%p5892_p6), %s328_s2, 4294967040  ;;  %s338_s13 = sand.u32 1, %s5061_s19   ;;  %p5893_p1 = scmp.ne.s32.totalorder %s5883_s8, 0 }
  0xe3   : > { %s5534_s22 = sshll.u32 %s338_s13, 4 }
  0xe4   : > { %s340_s17 = scalar_lea.vmem [#allocation7], %s5534_s22 }
  0xe5   : > { %5040 = dma.done.wait (%p5893_p1), %s328_s2, 256  }
  0xe6   : > { %5042 = vsyncadd (%p5893_p1), %s328_s2, 4294967040  ;;  %p5894_p13 = scmp.eq.s32.totalorder %s5221_s7, 0 }
  0xe8   : > { %5044 = dma.done.wait (%p5894_p13), [#allocation9], 49216   ;;  %p5895_p0 = pmov %p5894_p13 }
  0xe9   : > { %v4213_v0 = vld [vmem:[#allocation8 + $0x404] ss:$16 sps:$4 sm:$0xff]   ;;  %v4217_v2 = vld [vmem:[#allocation8 + $0x400] ss:$16 sps:$4 sm:$0xff]   ;;  %s5896_s7 = sld [smem:[#allocation20_spill]]  ;;  %v518_v30 = vlaneseq  ;;  %vm502_vm5 = vcmask 1040384  }
  0xea   : > { %5046 = vsyncadd (%p5895_p0), [#allocation9], 4294918080  ;;  %v4215_v1 = vld [vmem:[#allocation8 + $0x604] ss:$16 sps:$4 sm:$0xff]   ;;  %1475 = vmatprep.subr.bf16.mxu0 %v4213_v0  ;;  %v4218_v3 = vld [vmem:[#allocation8 + $0x600] ss:$16 sps:$4 sm:$0xff]  }
  0xeb   : > { %1516 = vmatprep.subr.bf16.mxu1 %v4215_v1  ;;  %v4219_v4 = vld [vmem:[#allocation8 + $0x424] ss:$16 sps:$4 sm:$0xff]   ;;  %1476 = vmatpush1.bf16.msra.mxu0 %v4217_v2  ;;  %v4223_v6 = vld [vmem:[#allocation8 + $0x420] ss:$16 sps:$4 sm:$0xff]   ;;  %v5546_v35 = vshrl.u32 %v518_v30, 7  ;;  %vm509_vm6 = vcmask 1044480  }
  0xec   : > { %1517 = vmatpush1.bf16.msra.mxu1 %v4218_v3  ;;  %v4221_v5 = vld [vmem:[#allocation8 + $0x624] ss:$16 sps:$4 sm:$0xff]   ;;  %1477 = vmatprep.subr.bf16.mxu0 %v4219_v4  ;;  %v4224_v7 = vld [vmem:[#allocation8 + $0x620] ss:$16 sps:$4 sm:$0xff]   ;;  %vm503_vm0 = vsmask.f32 256 }
  0xed   : > { %1518 = vmatprep.subr.bf16.mxu1 %v4221_v5  ;;  %v4225_v8 = vld [vmem:[#allocation8 + $0x444] ss:$16 sps:$4 sm:$0xff]   ;;  %v4229_v10 = vld [vmem:[#allocation8 + $0x440] ss:$16 sps:$4 sm:$0xff]   ;;  %v520_v40 = vadd.s32 8, %v5546_v35  ;;  %v395_v2 = vld [vmem:[%s331_s21 + $0x8] sm:$0xff] }
  0xee   : > { %v4227_v9 = vld [vmem:[#allocation8 + $0x644] ss:$16 sps:$4 sm:$0xff]   ;;  %v4230_v11 = vld [vmem:[#allocation8 + $0x640] ss:$16 sps:$4 sm:$0xff]   ;;  %vm510_vm8 = vsmask.f32 4352  ;;  %vm5594_vm12 = vmand %vm502_vm5, %vm503_vm0 }
  0xef   : > { %1478 = vmatpush1.bf16.msra.mxu0 %v4223_v6  ;;  %v4231_v12 = vld [vmem:[#allocation8 + $0x464] ss:$16 sps:$4 sm:$0xff]   ;;  %v4235_v14 = vld [vmem:[#allocation8 + $0x460] ss:$16 sps:$4 sm:$0xff]   ;;  %s3648_s8 = sshll.u32 %s5896_s7, 3  ;;  %v397_v3 = vld [vmem:[%s322_s4 + $0x8] sm:$0xff] }
  0xf0   : > { %1519 = vmatpush1.bf16.msra.mxu1 %v4224_v7  ;;  %1479 = vmatprep.subr.bf16.mxu0 %v4225_v8  ;;  %v4233_v13 = vld [vmem:[#allocation8 + $0x664] ss:$16 sps:$4 sm:$0xff]   ;;  %v4236_v15 = vld [vmem:[#allocation8 + $0x660] ss:$16 sps:$4 sm:$0xff]   ;;  %s3649_s28 = sadd.s32 4294967295, %s3648_s8  ;;  %v5585_v7 = vld [vmem:[%s340_s17 + $0x8] sm:$0xff]  ;;  %v3638_v8 = vcombine.low %v397_v3, %v397_v3 }
  0xf1   : > { %1520 = vmatprep.subr.bf16.mxu1 %v4227_v9  ;;  %v4237_v16 = vld [vmem:[#allocation8 + $0x484] ss:$16 sps:$4 sm:$0xff]   ;;  %v4241_v18 = vld [vmem:[#allocation8 + $0x480] ss:$16 sps:$4 sm:$0xff]   ;;  %v521_v41 = vstv %s3649_s28  ;;  %vm5602_vm13 = vmand %vm509_vm6, %vm510_vm8  ;;  %s5907_s18 = sld [smem:[#allocation21_spill]]  ;;  %s4046_s0 = sshll.u32 %s5896_s7, 2 }
  0xf2   : > { %v4239_v17 = vld [vmem:[#allocation8 + $0x684] ss:$16 sps:$4 sm:$0xff]   ;;  %v4242_v19 = vld [vmem:[#allocation8 + $0x680] ss:$16 sps:$4 sm:$0xff]   ;;  %v522_v45 = vadd.s32 %v521_v41, %v5546_v35  ;;  %v523_v47 = vadd.s32 %v521_v41, %v520_v40  ;;  %s3437_s8 = scalar_lea.sflag [#allocation4], %s329_s3  ;;  %p5909_p9 = scmp.ne.s32.totalorder %s5864_s14, 0 }
  0xf3   : > { %1480 = vmatpush1.bf16.msra.mxu0 %v4229_v10  ;;  %v4243_v20 = vld [vmem:[#allocation8 + $0x4a4] ss:$16 sps:$4 sm:$0xff]   ;;  %v4247_v22 = vld [vmem:[#allocation8 + $0x4a0] ss:$16 sps:$4 sm:$0xff]  }
  0xf4   : > { %1521 = vmatpush1.bf16.msra.mxu1 %v4230_v11  ;;  %1481 = vmatprep.subr.bf16.mxu0 %v4231_v12  ;;  %v4245_v21 = vld [vmem:[#allocation8 + $0x6a4] ss:$16 sps:$4 sm:$0xff]   ;;  %v4248_v23 = vld [vmem:[#allocation8 + $0x6a0] ss:$16 sps:$4 sm:$0xff]   ;;  %vm524_vm1 = vcmp.ge.s32.totalorder %v522_v45, 0  ;;  %vm526_vm2 = vcmp.lt.s32.totalorder %v522_v45, 16 }
  0xf5   : > { %1522 = vmatprep.subr.bf16.mxu1 %v4233_v13  ;;  %v4249_v24 = vld [vmem:[#allocation8 + $0x4c4] ss:$16 sps:$4 sm:$0xff]   ;;  %v4253_v26 = vld [vmem:[#allocation8 + $0x4c0] ss:$16 sps:$4 sm:$0xff]   ;;  %vm525_vm3 = vcmp.ge.s32.totalorder %v523_v47, 0  ;;  %vm527_vm4 = vcmp.lt.s32.totalorder %v523_v47, 16  ;;  %vm5562_vm7 = vmand %vm524_vm1, %vm526_vm2  ;;  %v3639_v13 = vcombine.high %v397_v3, %v397_v3 }
  0xf6   : > { %v4251_v25 = vld [vmem:[#allocation8 + $0x6c4] ss:$16 sps:$4 sm:$0xff]   ;;  %v4254_v27 = vld [vmem:[#allocation8 + $0x6c0] ss:$16 sps:$4 sm:$0xff]   ;;  %vm5570_vm9 = vmand %vm525_vm3, %vm527_vm4  ;;  %v5118_v11 = vmov 0  }
  0xf7   : > { %1482 = vmatpush1.bf16.msra.mxu0 %v4235_v14  ;;  %v4255_v28 = vld [vmem:[#allocation8 + $0x4e4] ss:$16 sps:$4 sm:$0xff]   ;;  %v4259_v31 = vld [vmem:[#allocation8 + $0x4e0] ss:$16 sps:$4 sm:$0xff]   ;;  %vm534_vm10 = vmpackc.low %vm5562_vm7, %vm5562_vm7  ;;  %v5590_v14 = vcombine.low %v395_v2, %v395_v2  ;;  %s4047_s27 = sshll.u32 %s5907_s18, 3  ;;  %s5119_s18 = smov [#allocation11]  }
  0xf8   : > { %1523 = vmatpush1.bf16.msra.mxu1 %v4236_v15  ;;  %1483 = vmatprep.subr.bf16.mxu0 %v4237_v16  ;;  %v4257_v29 = vld [vmem:[#allocation8 + $0x6e4] ss:$16 sps:$4 sm:$0xff]   ;;  %v4260_v32 = vld [vmem:[#allocation8 + $0x6e0] ss:$16 sps:$4 sm:$0xff]   ;;  %vm535_vm11 = vmpackc.low %vm5570_vm9, %vm5570_vm9  ;;  %v536_v12 = vsel %vm534_vm10, 65537, %v5118_v11 }
  0xf9   : > { %1524 = vmatprep.subr.bf16.mxu1 %v4239_v17  ;;  %v4261_v33 = vld [vmem:[#allocation8 + $0x504] ss:$16 sps:$4 sm:$0xff]   ;;  %v4265_v36 = vld [vmem:[#allocation8 + $0x500] ss:$16 sps:$4 sm:$0xff]  }
  0xfa   : > { %v4263_v34 = vld [vmem:[#allocation8 + $0x704] ss:$16 sps:$4 sm:$0xff]   ;;  %v4266_v37 = vld [vmem:[#allocation8 + $0x700] ss:$16 sps:$4 sm:$0xff]  }
  0xfb   : > { %1484 = vmatpush1.bf16.msra.mxu0 %v4241_v18  ;;  %v4267_v38 = vld [vmem:[#allocation8 + $0x524] ss:$16 sps:$4 sm:$0xff]   ;;  %v4271_v42 = vld [vmem:[#allocation8 + $0x520] ss:$16 sps:$4 sm:$0xff]  }
  0xfc   : > { %1525 = vmatpush1.bf16.msra.mxu1 %v4242_v19  ;;  %1485 = vmatprep.subr.bf16.mxu0 %v4243_v20  ;;  %v4269_v39 = vld [vmem:[#allocation8 + $0x724] ss:$16 sps:$4 sm:$0xff]   ;;  %v4272_v43 = vld [vmem:[#allocation8 + $0x720] ss:$16 sps:$4 sm:$0xff]   ;;  %v537_v19 = vsel %vm535_vm11, 65537, %v5118_v11  ;;  %v3643_v20 = vcombine.high %v395_v2, %v395_v2  ;;  %v458_v2 = vshll.u32 %v5590_v14, 16 }
  0xfd   : > { %1526 = vmatprep.subr.bf16.mxu1 %v4245_v21  ;;  %v4273_v44 = vld [vmem:[#allocation8 + $0x544] ss:$16 sps:$4 sm:$0xff]   ;;  %v4277_v48 = vld [vmem:[#allocation8 + $0x540] ss:$16 sps:$4 sm:$0xff]  }
  0xfe   : > { %v4275_v46 = vld [vmem:[#allocation8 + $0x744] ss:$16 sps:$4 sm:$0xff]   ;;  %v4278_v49 = vld [vmem:[#allocation8 + $0x740] ss:$16 sps:$4 sm:$0xff]   ;;  %v462_v30 = vshrl.u32 %v3643_v20, 16 }
  0xff   : > { %1486 = vmatpush1.bf16.msra.mxu0 %v4247_v22  ;;  %v4279_v50 = vld [vmem:[#allocation8 + $0x564] ss:$16 sps:$4 sm:$0xff]   ;;  %v4283_v52 = vld [vmem:[#allocation8 + $0x560] ss:$16 sps:$4 sm:$0xff]  }
 0x100   : > { %1527 = vmatpush1.bf16.msra.mxu1 %v4248_v23  ;;  %1487 = vmatprep.subr.bf16.mxu0 %v4249_v24  ;;  %v4281_v51 = vld [vmem:[#allocation8 + $0x764] ss:$16 sps:$4 sm:$0xff]   ;;  %v4284_v53 = vld [vmem:[#allocation8 + $0x760] ss:$16 sps:$4 sm:$0xff]   ;;  %v3650_v23 = vcombine.low %v536_v12, %v537_v19  ;;  %v423_v24 = vshrl.u32 %v3639_v13, 16  ;;  %v464_v40 = vrot.slane %v462_v30, 7 }
 0x101   : > { %1528 = vmatprep.subr.bf16.mxu1 %v4251_v25  ;;  %v394_v54 = vld [vmem:[%s331_s21] sm:$0xff]  ;;  %v3646_v25 = vcombine.low %v5585_v7, %v5585_v7 }
 0x102   : > { %v4285_v55 = vld [vmem:[#allocation8 + $0x584] ss:$16 sps:$4 sm:$0xff]   ;;  %v5558_v59 = vcombine.low %v394_v54, %v394_v54  ;;  %v3641_v60 = vcombine.high %v394_v54, %v394_v54  ;;  %v4289_v9 = vld [vmem:[#allocation8 + $0x580] ss:$16 sps:$4 sm:$0xff]   ;;  %vm5606_vm14 = vcmp.ne.s16.totalorder %v3650_v23, 0 }
 0x103   : > { %1488 = vmatpush1.bf16.msra.mxu0 %v4253_v26  ;;  %v4287_v56 = vld [vmem:[#allocation8 + $0x784] ss:$16 sps:$4 sm:$0xff]   ;;  %v4290_v15 = vld [vmem:[#allocation8 + $0x780] ss:$16 sps:$4 sm:$0xff]   ;;  %v491_v3 = vshll.u32 %v3646_v25, 16 }
 0x104   : > { %1529 = vmatpush1.bf16.msra.mxu1 %v4254_v27  ;;  %1489 = vmatprep.subr.bf16.mxu0 %v4255_v28  ;;  %v396_v57 = vld [vmem:[%s322_s4] sm:$0xff]  ;;  %v448_v4 = vshrl.u32 %v3641_v60, 16  ;;  %v451_v5 = vshll.u32 %v3641_v60, 16  ;;  %v441_v41 = vshrl.u32 %v5558_v59, 16  ;;  %s384_s4 = scalar_lea.vmem [#allocation11], %s5526_s24  ;;  %s3449_s24 = sadd.s32 %s4047_s27, %s4046_s0 }
 0x105   : > { %1530 = vmatprep.subr.bf16.mxu1 %v4257_v29  ;;  %v5556_v58 = vld [vmem:[%s340_s17] sm:$0xff]  ;;  %v3636_v62 = vcombine.low %v396_v57, %v396_v57  ;;  %v3637_v63 = vcombine.high %v396_v57, %v396_v57  ;;  %v4329_v29 = vld [vmem:[#allocation8 + $0x42c] ss:$16 sps:$4 sm:$0xff]   ;;  %s4048_s2 = sshll.u32 %s3449_s24, 6  ;;  %s3453_s21 = sshll.u32 %s384_s4, 4  ;;  %s5744_s21 = int_to_ptr.vmem [resolvable:$true] %s3453_s21 }
 0x106   : > { %v3644_v0 = vcombine.low %v5556_v58, %v5556_v58  ;;  %v3645_v6 = vcombine.high %v5556_v58, %v5556_v58  ;;  %v450_v16 = vrot.slane %v448_v4, 7  ;;  %v4291_v21 = vld [vmem:[#allocation8 + $0x5a4] ss:$16 sps:$4 sm:$0xff]   ;;  %v4302_v54 = vld [vmem:[#allocation8 + $0x7c0] ss:$16 sps:$4 sm:$0xff]   ;;  %s5908_s17 = sld [smem:[#allocation29_spill]] }
 0x107   : > { %1490 = vmatpush1.bf16.msra.mxu0 %v4259_v31  ;;  %v415_v10 = vshrl.u32 %v3637_v63, 16  ;;  %v4293_v26 = vld [vmem:[#allocation8 + $0x7a4] ss:$16 sps:$4 sm:$0xff]   ;;  %v465_v31 = vshll.u32 %v3643_v20, 16  ;;  %v4307_v12 = vld [vmem:[#allocation8 + $0x5e0] ss:$16 sps:$4 sm:$0xff]  }
 0x108   : > { %1531 = vmatpush1.bf16.msra.mxu1 %v4260_v32  ;;  %1491 = vmatprep.subr.bf16.mxu0 %v4261_v33  ;;  %v487_v17 = vshll.u32 %v3645_v6, 16  ;;  %v453_v27 = vor.u32 %v451_v5, %v450_v16  ;;  %v4295_v32 = vld [vmem:[#allocation8 + $0x5a0] ss:$16 sps:$4 sm:$0xff]   ;;  %v483_v47 = vshll.u32 %v3644_v0, 16  ;;  %v4305_v63 = vld [vmem:[#allocation8 + $0x7e4] ss:$16 sps:$4 sm:$0xff]  }
 0x109   : > { %1532 = vmatprep.subr.bf16.mxu1 %v4263_v34  ;;  %v417_v22 = vrot.slane %v415_v10, 3  ;;  %v425_v34 = vrot.slane %v423_v24, 3  ;;  %v4308_v16 = vld [vmem:[#allocation8 + $0x7e0] ss:$16 sps:$4 sm:$0xff]   ;;  %v4635_v33 = vld [vmem:[#allocation8 + $0x884] ss:$16 sps:$4 sm:$0xff]  }
 0x10a   : > { %v489_v28 = vrot.slane %v487_v17, 4  ;;  %v485_v58 = vrot.slane %v483_v47, 4  ;;  %v4344_v47 = vld [vmem:[#allocation8 + $0x66c] ss:$16 sps:$4 sm:$0xff]   ;;  %s4947_s28 = scalar_lea.vmem %s5744_s21, 256  ;;  %s4951_s0 = sshll.u32 %s5119_s18, 4  ;;  %s4952_s0 = int_to_ptr.vmem [resolvable:$false] %s4951_s0 }
 0x10b   : > { %1492 = vmatpush1.bf16.msra.mxu0 %v4265_v36  ;;  %v3647_v36 = vcombine.high %v5585_v7, %v5585_v7  ;;  %p4948_p5 = scmp.ne.s32.totalorder %s5744_s21, %s4947_s28  ;;  %s4953_s27 = scalar_lea.vmem %s4952_s0, 512 }
 0x10c   : > { %1533 = vmatpush1.bf16.msra.mxu1 %v4266_v37  ;;  %1493 = vmatprep.subr.bf16.mxu0 %v4267_v38  ;;  %v411_v37 = vshrl.u32 %v3636_v62, 16  ;;  %v4296_v38 = vld [vmem:[#allocation8 + $0x7a0] ss:$16 sps:$4 sm:$0xff]   ;;  %v455_v62 = vshrl.u32 %v5590_v14, 16  ;;  %s5742_s7 = scalar_lea.hbm %s5908_s17, %s4048_s2  ;;  %p4954_p7 = scmp.lt.s32.totalorder %s5744_s21, %s4952_s0 }
 0x10d   : > { %1534 = vmatprep.subr.bf16.mxu1 %v4269_v39  ;;  %v506_v39 = vsel %vm5594_vm12, %v417_v22, %v453_v27  ;;  %v495_v45 = vshll.u32 %v3647_v36, 16  ;;  %v4323_v22 = vld [vmem:[#allocation8 + $0x40c] ss:$16 sps:$4 sm:$0xff]   ;;  %v4327_v36 = vld [vmem:[#allocation8 + $0x428] ss:$16 sps:$4 sm:$0xff]   ;;  %p4949_p10 = pnand %p4948_p5, %p5909_p9  ;;  %p4955_p2 = scmp.lt.s32.totalorder %s4953_s27, %s4947_s28 }
 0x10e   : > { %v457_v7 = vrot.slane %v455_v62, 7  ;;  %v4360_v62 = vld [vmem:[#allocation8 + $0x6c8] ss:$16 sps:$4 sm:$0xff]  }
 0x10f   : > { %1494 = vmatpush1.bf16.msra.mxu0 %v4271_v42  ;;  %v444_v42 = vshll.u32 %v5558_v59, 16  ;;  %v497_v57 = vrot.slane %v495_v45, 4  ;;  %v4303_v59 = vld [vmem:[#allocation8 + $0x5e4] ss:$16 sps:$4 sm:$0xff]   ;;  %v4336_v45 = vld [vmem:[#allocation8 + $0x648] ss:$16 sps:$4 sm:$0xff]   ;;  %p4950_p8 = pneg %p4949_p10  ;;  %p4956_p11 = por %p4955_p2, %p4954_p7 }
 0x110   : > { %1535 = vmatpush1.bf16.msra.mxu1 %v4272_v43  ;;  %1495 = vmatprep.subr.bf16.mxu0 %v4273_v44  ;;  %v4297_v43 = vld [vmem:[#allocation8 + $0x5c4] ss:$16 sps:$4 sm:$0xff]   ;;  %v5618_v44 = vsel %vm5602_vm13, %v506_v39, %v489_v28  ;;  %v460_v14 = vor.u32 %v458_v2, %v457_v7  ;;  %v4335_v39 = vld [vmem:[#allocation8 + $0x44c] ss:$16 sps:$4 sm:$0xff]  }
 0x111   : > { %1536 = vmatprep.subr.bf16.mxu1 %v4275_v46  ;;  %v413_v46 = vrot.slane %v411_v37, 3  ;;  %v4371_v2 = vld [vmem:[#allocation8 + $0x50c] ss:$16 sps:$4 sm:$0xff]   ;;  %p4957_p3 = pnand %p4956_p11, %p4950_p8 }
 0x112   : > { %v4377_v7 = vld [vmem:[#allocation8 + $0x52c] ss:$16 sps:$4 sm:$0xff]  }
 0x113   : > { %1496 = vmatpush1.bf16.msra.mxu0 %v4277_v48  ;;  %v4299_v48 = vld [vmem:[#allocation8 + $0x7c4] ss:$16 sps:$4 sm:$0xff]  }
 0x114   : > { %1537 = vmatpush1.bf16.msra.mxu1 %v4278_v49  ;;  %1497 = vmatprep.subr.bf16.mxu0 %v4279_v50  ;;  %v5623_v49 = vsel %vm5606_vm14, %v5618_v44, 0  ;;  %v467_v50 = vor.u32 %v465_v31, %v464_v40  ;;  %v4321_v31 = vld [vmem:[#allocation8 + $0x408] ss:$16 sps:$4 sm:$0xff]  }
 0x115   : > { %1538 = vmatprep.subr.bf16.mxu1 %v4281_v51  ;;  %v443_v51 = vrot.slane %v441_v41, 7  ;;  %v4330_v40 = vld [vmem:[#allocation8 + $0x628] ss:$16 sps:$4 sm:$0xff]  }
 0x116   : > { %v508_v60 = vsel %vm5594_vm12, %v425_v34, %v467_v50  ;;  %v4324_v34 = vld [vmem:[#allocation8 + $0x608] ss:$16 sps:$4 sm:$0xff]  }
 0x117   : > { %1498 = vmatpush1.bf16.msra.mxu0 %v4283_v52  ;;  %v419_v52 = vshrl.u32 %v3638_v8, 16  ;;  %v446_v61 = vor.u32 %v444_v42, %v443_v51  ;;  %v5632_v1 = vsel %vm5602_vm13, %v508_v60, %v497_v57  ;;  %v4333_v41 = vld [vmem:[#allocation8 + $0x448] ss:$16 sps:$4 sm:$0xff]   ;;  %v4338_v42 = vld [vmem:[#allocation8 + $0x64c] ss:$16 sps:$4 sm:$0xff]  }
 0x118   : > { %1539 = vmatpush1.bf16.msra.mxu1 %v4284_v53  ;;  %1499 = vmatprep.subr.bf16.mxu0 %v4285_v55  ;;  %v4301_v53 = vld [vmem:[#allocation8 + $0x5c0] ss:$16 sps:$4 sm:$0xff]   ;;  %v811_v55 = vshrl.u32 %v5623_v49, 16  ;;  %v5638_v4 = vsel %vm5606_vm14, %v5632_v1, 0  ;;  %v4342_v50 = vld [vmem:[#allocation8 + $0x668] ss:$16 sps:$4 sm:$0xff]  }
 0x119   : > { %1540 = vmatprep.subr.bf16.mxu1 %v4287_v56  ;;  %v813_v56 = vshll.u32 %v5623_v49, 16  ;;  %v505_v5 = vsel %vm5594_vm12, %v413_v46, %v446_v61  ;;  %v421_v6 = vrot.slane %v419_v52, 3  ;;  %v827_v10 = vshll.u32 %v5638_v4, 16  ;;  %v4339_v46 = vld [vmem:[#allocation8 + $0x468] ss:$16 sps:$4 sm:$0xff]  }
 0x11a   : > { %v5646_v11 = vsel %vm5602_vm13, %v505_v5, %v485_v58  ;;  %v4345_v51 = vld [vmem:[#allocation8 + $0x488] ss:$16 sps:$4 sm:$0xff]   ;;  %v4350_v52 = vld [vmem:[#allocation8 + $0x68c] ss:$16 sps:$4 sm:$0xff]  }
 0x11b   : > { %1500 = vmatpush1.bf16.msra.mxu0 %v4289_v9  ;;  %v815_v0 = vrot.slane %v813_v56, 1  ;;  %v825_v9 = vshrl.u32 %v5638_v4, 16  ;;  %v5651_v13 = vsel %vm5606_vm14, %v5646_v11, 0  ;;  %v829_v17 = vrot.slane %v827_v10, 1  ;;  %v4356_v56 = vld [vmem:[#allocation8 + $0x6ac] ss:$16 sps:$4 sm:$0xff]  }
 0x11c   : > { %1541 = vmatpush1.bf16.msra.mxu1 %v4290_v15  ;;  %1501 = vmatprep.subr.bf16.mxu0 %v4291_v21  ;;  %v493_v15 = vrot.slane %v491_v3, 4  ;;  %v804_v19 = vshrl.u32 %v5651_v13, 16  ;;  %v806_v20 = vshll.u32 %v5651_v13, 16  ;;  %v507_v21 = vsel %vm5594_vm12, %v421_v6, %v460_v14  ;;  %v4359_v57 = vld [vmem:[#allocation8 + $0x4cc] ss:$16 sps:$4 sm:$0xff]  }
 0x11d   : > { %1542 = vmatprep.subr.bf16.mxu1 %v4293_v26  ;;  %v816_v8 = vor.u32 %v815_v0, %v811_v55  ;;  %v830_v23 = vor.u32 %v829_v17, %v825_v9  ;;  %v4326_v26 = vld [vmem:[#allocation8 + $0x60c] ss:$16 sps:$4 sm:$0xff]   ;;  %v4351_v55 = vld [vmem:[#allocation8 + $0x4a8] ss:$16 sps:$4 sm:$0xff]  }
 0x11e   : > { %v808_v24 = vrot.slane %v806_v20, 1  ;;  %v5659_v25 = vsel %vm5602_vm13, %v507_v21, %v493_v15  ;;  %v4354_v58 = vld [vmem:[#allocation8 + $0x6a8] ss:$16 sps:$4 sm:$0xff]   ;;  %v4362_v60 = vld [vmem:[#allocation8 + $0x6cc] ss:$16 sps:$4 sm:$0xff]  }
 0x11f   : > { %1502 = vmatpush1.bf16.msra.mxu0 %v4295_v32  ;;  %1507 = vmatprep.mubr.bf16.mxu0 %v816_v8  ;;  %v5664_v27 = vsel %vm5606_vm14, %v5659_v25, 0  ;;  %v4365_v61 = vld [vmem:[#allocation8 + $0x4ec] ss:$16 sps:$4 sm:$0xff]   ;;  %v4366_v3 = vld [vmem:[#allocation8 + $0x6e8] ss:$16 sps:$4 sm:$0xff]  }
 0x120   : > { %1543 = vmatpush1.bf16.msra.mxu1 %v4296_v38  ;;  %1503 = vmatprep.subr.bf16.mxu0 %v4297_v43  ;;  %v5666_v28 = vor.u32 %v808_v24, %v804_v19  ;;  %v818_v18 = vshrl.u32 %v5664_v27, 16  ;;  %v820_v30 = vshll.u32 %v5664_v27, 16  ;;  %v4332_v38 = vld [vmem:[#allocation8 + $0x62c] ss:$16 sps:$4 sm:$0xff]   ;;  %v4369_v5 = vld [vmem:[#allocation8 + $0x508] ss:$16 sps:$4 sm:$0xff]  }
 0x121   : > { %1544 = vmatprep.subr.bf16.mxu1 %v4299_v48  ;;  %1548 = vmatprep.mubr.bf16.mxu1 %v830_v23  ;;  %v4341_v43 = vld [vmem:[#allocation8 + $0x46c] ss:$16 sps:$4 sm:$0xff]   ;;  %v4375_v9 = vld [vmem:[#allocation8 + $0x528] ss:$16 sps:$4 sm:$0xff]  }
 0x122   : > { %v822_v32 = vrot.slane %v820_v30, 1  ;;  %v4347_v48 = vld [vmem:[#allocation8 + $0x48c] ss:$16 sps:$4 sm:$0xff]   ;;  %v4378_v14 = vld [vmem:[#allocation8 + $0x728] ss:$16 sps:$4 sm:$0xff]  }
 0x123   : > { %1504 = vmatpush1.bf16.msra.mxu0 %v4301_v53  ;;  %v4353_v53 = vld [vmem:[#allocation8 + $0x4ac] ss:$16 sps:$4 sm:$0xff]   ;;  %v4381_v15 = vld [vmem:[#allocation8 + $0x548] ss:$16 sps:$4 sm:$0xff]  }
 0x124   : > { %1545 = vmatpush1.bf16.msra.mxu1 %v4302_v54  ;;  %1505 = vmatprep.subr.bf16.mxu0 %v4303_v59  ;;  %v5671_v37 = vor.u32 %v822_v32, %v818_v18  ;;  %v4348_v54 = vld [vmem:[#allocation8 + $0x688] ss:$16 sps:$4 sm:$0xff]   ;;  %v4368_v0 = vld [vmem:[#allocation8 + $0x6ec] ss:$16 sps:$4 sm:$0xff]  }
 0x125   : > { %1546 = vmatprep.subr.bf16.mxu1 %v4305_v63  ;;  %v4357_v59 = vld [vmem:[#allocation8 + $0x4c8] ss:$16 sps:$4 sm:$0xff]   ;;  %v4374_v6 = vld [vmem:[#allocation8 + $0x70c] ss:$16 sps:$4 sm:$0xff]  }
 0x126   : > { %v4363_v63 = vld [vmem:[#allocation8 + $0x4e8] ss:$16 sps:$4 sm:$0xff]   ;;  %v4380_v10 = vld [vmem:[#allocation8 + $0x72c] ss:$16 sps:$4 sm:$0xff]  }
 0x127   : > { %1506 = vmatpush1.bf16.msra.mxu0 %v4307_v12  ;;  %v4383_v12 = vld [vmem:[#allocation8 + $0x54c] ss:$16 sps:$4 sm:$0xff]   ;;  %v4384_v19 = vld [vmem:[#allocation8 + $0x748] ss:$16 sps:$4 sm:$0xff]  }
 0x128   : > { %1547 = vmatpush1.bf16.msra.mxu1 %v4308_v16  ;;  %1557 = vmatprep.subr.bf16.mxu0 %v4323_v22  ;;  %v4386_v16 = vld [vmem:[#allocation8 + $0x74c] ss:$16 sps:$4 sm:$0xff]   ;;  %v4387_v20 = vld [vmem:[#allocation8 + $0x568] ss:$16 sps:$4 sm:$0xff]  }
 0x129   : > { %1598 = vmatprep.subr.bf16.mxu1 %v4326_v26  ;;  %v4389_v17 = vld [vmem:[#allocation8 + $0x56c] ss:$16 sps:$4 sm:$0xff]   ;;  %v4393_v24 = vld [vmem:[#allocation8 + $0x588] ss:$16 sps:$4 sm:$0xff]  }
 0x12a   : > { %1508 = vmatmul.mubr.bf16.vlgmr.msra.gmra.mrb[0].mxu0 %v5666_v28  ;;  %v4392_v21 = vld [vmem:[#allocation8 + $0x76c] ss:$16 sps:$4 sm:$0xff]   ;;  %v4396_v30 = vld [vmem:[#allocation8 + $0x788] ss:$16 sps:$4 sm:$0xff]  }
 0x12b   : > { %1558 = vmatpush1.bf16.msra.mxu0 %v4321_v31  ;;  %1589 = vmatprep.mubr.bf16.mxu0 %v816_v8  ;;  %v4372_v8 = vld [vmem:[#allocation8 + $0x708] ss:$16 sps:$4 sm:$0xff]   ;;  %v4395_v22 = vld [vmem:[#allocation8 + $0x58c] ss:$16 sps:$4 sm:$0xff]  }
 0x12c   : > { %1559 = vmatprep.subr.bf16.mxu0 %v4329_v29  ;;  %1549 = vmatmul.mubr.bf16.vlgmr.msra.gmra.mrb[0].mxu1 %v5671_v37  ;;  %v4398_v26 = vld [vmem:[#allocation8 + $0x78c] ss:$16 sps:$4 sm:$0xff]   ;;  %v4399_v31 = vld [vmem:[#allocation8 + $0x5a8] ss:$16 sps:$4 sm:$0xff]  }
 0x12d   : > { %1599 = vmatpush1.bf16.msra.mxu1 %v4324_v34  ;;  %1630 = vmatprep.mubr.bf16.mxu1 %v830_v23  ;;  %v4390_v23 = vld [vmem:[#allocation8 + $0x768] ss:$16 sps:$4 sm:$0xff]   ;;  %v4401_v18 = vld [vmem:[#allocation8 + $0x5ac] ss:$16 sps:$4 sm:$0xff]  }
 0x12e   : > { %1600 = vmatprep.subr.bf16.mxu1 %v4332_v38  ;;  %v4404_v29 = vld [vmem:[#allocation8 + $0x7ac] ss:$16 sps:$4 sm:$0xff]   ;;  %v4402_v34 = vld [vmem:[#allocation8 + $0x7a8] ss:$16 sps:$4 sm:$0xff]  }
 0x12f   : > { %1560 = vmatpush1.bf16.msra.mxu0 %v4327_v36  ;;  %v4407_v32 = vld [vmem:[#allocation8 + $0x5cc] ss:$16 sps:$4 sm:$0xff]   ;;  %v4405_v36 = vld [vmem:[#allocation8 + $0x5c8] ss:$16 sps:$4 sm:$0xff]  }
 0x130   : > { %1561 = vmatprep.subr.bf16.mxu0 %v4335_v39  ;;  %v4410_v38 = vld [vmem:[#allocation8 + $0x7cc] ss:$16 sps:$4 sm:$0xff]  }
 0x131   : > { %1601 = vmatpush1.bf16.msra.mxu1 %v4330_v40  ;;  %v4413_v39 = vld [vmem:[#allocation8 + $0x5ec] ss:$16 sps:$4 sm:$0xff]   ;;  %v4408_v40 = vld [vmem:[#allocation8 + $0x7c8] ss:$16 sps:$4 sm:$0xff]  }
 0x132   : > { %1602 = vmatprep.subr.bf16.mxu1 %v4338_v42  ;;  %v4416_v42 = vld [vmem:[#allocation8 + $0x7ec] ss:$16 sps:$4 sm:$0xff]  }
 0x133   : > { %1562 = vmatpush1.bf16.msra.mxu0 %v4333_v41  ;;  %v4411_v41 = vld [vmem:[#allocation8 + $0x5e8] ss:$16 sps:$4 sm:$0xff]  }
 0x134   : > { %1563 = vmatprep.subr.bf16.mxu0 %v4341_v43  ;;  %v4419_v43 = vld [vmem:[#allocation8 + $0x4] ss:$16 sps:$4 sm:$0xff]  }
 0x135   : > { %1603 = vmatpush1.bf16.msra.mxu1 %v4336_v45  ;;  %v4414_v45 = vld [vmem:[#allocation8 + $0x7e8] ss:$16 sps:$4 sm:$0xff]  }
 0x136   : > { %1604 = vmatprep.subr.bf16.mxu1 %v4344_v47  ;;  %v4422_v47 = vld [vmem:[#allocation8 + $0x204] ss:$16 sps:$4 sm:$0xff]  }
 0x137   : > { %1564 = vmatpush1.bf16.msra.mxu0 %v4339_v46  ;;  %v4417_v46 = vld [vmem:[#allocation8] ss:$16 sps:$4 sm:$0xff]  }
 0x138   : > { %1565 = vmatprep.subr.bf16.mxu0 %v4347_v48  ;;  %v4425_v48 = vld [vmem:[#allocation8 + $0x24] ss:$16 sps:$4 sm:$0xff]  }
 0x139   : > { %1605 = vmatpush1.bf16.msra.mxu1 %v4342_v50  ;;  %v4420_v50 = vld [vmem:[#allocation8 + $0x200] ss:$16 sps:$4 sm:$0xff]  }
 0x13a   : > { %1606 = vmatprep.subr.bf16.mxu1 %v4350_v52  ;;  %v4428_v52 = vld [vmem:[#allocation8 + $0x224] ss:$16 sps:$4 sm:$0xff]  }
 0x13b   : > { %1566 = vmatpush1.bf16.msra.mxu0 %v4345_v51  ;;  %v4423_v51 = vld [vmem:[#allocation8 + $0x20] ss:$16 sps:$4 sm:$0xff]  }
 0x13c   : > { %1567 = vmatprep.subr.bf16.mxu0 %v4353_v53  ;;  %v4431_v53 = vld [vmem:[#allocation8 + $0x44] ss:$16 sps:$4 sm:$0xff]  }
 0x13d   : > { %1607 = vmatpush1.bf16.msra.mxu1 %v4348_v54  ;;  %v4426_v54 = vld [vmem:[#allocation8 + $0x220] ss:$16 sps:$4 sm:$0xff]  }
 0x13e   : > { %1608 = vmatprep.subr.bf16.mxu1 %v4356_v56  ;;  %v4437_v56 = vld [vmem:[#allocation8 + $0x64] ss:$16 sps:$4 sm:$0xff]  }
 0x13f   : > { %1568 = vmatpush1.bf16.msra.mxu0 %v4351_v55  ;;  %v4429_v55 = vld [vmem:[#allocation8 + $0x40] ss:$16 sps:$4 sm:$0xff]  }
 0x140   : > { %1569 = vmatprep.subr.bf16.mxu0 %v4359_v57  ;;  %v4432_v57 = vld [vmem:[#allocation8 + $0x240] ss:$16 sps:$4 sm:$0xff]  }
 0x141   : > { %1609 = vmatpush1.bf16.msra.mxu1 %v4354_v58  ;;  %v4435_v58 = vld [vmem:[#allocation8 + $0x60] ss:$16 sps:$4 sm:$0xff]  }
 0x142   : > { %1610 = vmatprep.subr.bf16.mxu1 %v4362_v60  ;;  %v4438_v60 = vld [vmem:[#allocation8 + $0x260] ss:$16 sps:$4 sm:$0xff]  }
 0x143   : > { %1570 = vmatpush1.bf16.msra.mxu0 %v4357_v59  ;;  %v4440_v59 = vld [vmem:[#allocation8 + $0x264] ss:$16 sps:$4 sm:$0xff]  }
 0x144   : > { %1571 = vmatprep.subr.bf16.mxu0 %v4365_v61  ;;  %v4441_v61 = vld [vmem:[#allocation8 + $0x80] ss:$16 sps:$4 sm:$0xff]  }
 0x145   : > { %1611 = vmatpush1.bf16.msra.mxu1 %v4360_v62  ;;  %v4446_v62 = vld [vmem:[#allocation8 + $0x284] ss:$16 sps:$4 sm:$0xff]  }
 0x146   : > { %1612 = vmatprep.subr.bf16.mxu1 %v4368_v0  ;;  %v4444_v0 = vld [vmem:[#allocation8 + $0x280] ss:$16 sps:$4 sm:$0xff]  }
 0x147   : > { %1572 = vmatpush1.bf16.msra.mxu0 %v4363_v63  ;;  %v4449_v63 = vld [vmem:[#allocation8 + $0xa4] ss:$16 sps:$4 sm:$0xff]  }
 0x148   : > { %1573 = vmatprep.subr.bf16.mxu0 %v4371_v2  ;;  %v4447_v2 = vld [vmem:[#allocation8 + $0xa0] ss:$16 sps:$4 sm:$0xff]  }
 0x149   : > { %1613 = vmatpush1.bf16.msra.mxu1 %v4366_v3  ;;  %v4452_v3 = vld [vmem:[#allocation8 + $0x2a4] ss:$16 sps:$4 sm:$0xff]  }
 0x14a   : > { %1614 = vmatprep.subr.bf16.mxu1 %v4374_v6  ;;  %v4450_v6 = vld [vmem:[#allocation8 + $0x2a0] ss:$16 sps:$4 sm:$0xff]  }
 0x14b   : > { %1574 = vmatpush1.bf16.msra.mxu0 %v4369_v5  ;;  %v4455_v5 = vld [vmem:[#allocation8 + $0xc4] ss:$16 sps:$4 sm:$0xff]  }
 0x14c   : > { %1575 = vmatprep.subr.bf16.mxu0 %v4377_v7  ;;  %v4453_v7 = vld [vmem:[#allocation8 + $0xc0] ss:$16 sps:$4 sm:$0xff]  }
 0x14d   : > { %1615 = vmatpush1.bf16.msra.mxu1 %v4372_v8  ;;  %v4458_v8 = vld [vmem:[#allocation8 + $0x2c4] ss:$16 sps:$4 sm:$0xff]  }
 0x14e   : > { %1616 = vmatprep.subr.bf16.mxu1 %v4380_v10  ;;  %v4456_v10 = vld [vmem:[#allocation8 + $0x2c0] ss:$16 sps:$4 sm:$0xff]  }
 0x14f   : > { %1576 = vmatpush1.bf16.msra.mxu0 %v4375_v9  ;;  %v4461_v9 = vld [vmem:[#allocation8 + $0xe4] ss:$16 sps:$4 sm:$0xff]  }
 0x150   : > { %1577 = vmatprep.subr.bf16.mxu0 %v4383_v12  ;;  %v4459_v12 = vld [vmem:[#allocation8 + $0xe0] ss:$16 sps:$4 sm:$0xff]  }
 0x151   : > { %1617 = vmatpush1.bf16.msra.mxu1 %v4378_v14  ;;  %v4464_v14 = vld [vmem:[#allocation8 + $0x2e4] ss:$16 sps:$4 sm:$0xff]  }
 0x152   : > { %1618 = vmatprep.subr.bf16.mxu1 %v4386_v16  ;;  %v4462_v16 = vld [vmem:[#allocation8 + $0x2e0] ss:$16 sps:$4 sm:$0xff]  }
 0x153   : > { %1578 = vmatpush1.bf16.msra.mxu0 %v4381_v15  ;;  %v4467_v15 = vld [vmem:[#allocation8 + $0x104] ss:$16 sps:$4 sm:$0xff]  }
 0x154   : > { %1579 = vmatprep.subr.bf16.mxu0 %v4389_v17  ;;  %v4465_v17 = vld [vmem:[#allocation8 + $0x100] ss:$16 sps:$4 sm:$0xff]  }
 0x155   : > { %1619 = vmatpush1.bf16.msra.mxu1 %v4384_v19  ;;  %v4470_v19 = vld [vmem:[#allocation8 + $0x304] ss:$16 sps:$4 sm:$0xff]  }
 0x156   : > { %1620 = vmatprep.subr.bf16.mxu1 %v4392_v21  ;;  %v4468_v21 = vld [vmem:[#allocation8 + $0x300] ss:$16 sps:$4 sm:$0xff]  }
 0x157   : > { %1580 = vmatpush1.bf16.msra.mxu0 %v4387_v20  ;;  %v4473_v20 = vld [vmem:[#allocation8 + $0x124] ss:$16 sps:$4 sm:$0xff]  }
 0x158   : > { %1581 = vmatprep.subr.bf16.mxu0 %v4395_v22  ;;  %v4471_v22 = vld [vmem:[#allocation8 + $0x120] ss:$16 sps:$4 sm:$0xff]  }
 0x159   : > { %1621 = vmatpush1.bf16.msra.mxu1 %v4390_v23  ;;  %v4476_v23 = vld [vmem:[#allocation8 + $0x324] ss:$16 sps:$4 sm:$0xff]  }
 0x15a   : > { %1622 = vmatprep.subr.bf16.mxu1 %v4398_v26  ;;  %v4474_v26 = vld [vmem:[#allocation8 + $0x320] ss:$16 sps:$4 sm:$0xff]  }
 0x15b   : > { %1582 = vmatpush1.bf16.msra.mxu0 %v4393_v24  ;;  %v4479_v24 = vld [vmem:[#allocation8 + $0x144] ss:$16 sps:$4 sm:$0xff]  }
 0x15c   : > { %1583 = vmatprep.subr.bf16.mxu0 %v4401_v18  ;;  %v4477_v18 = vld [vmem:[#allocation8 + $0x140] ss:$16 sps:$4 sm:$0xff]  }
 0x15d   : > { %1623 = vmatpush1.bf16.msra.mxu1 %v4396_v30  ;;  %v4482_v30 = vld [vmem:[#allocation8 + $0x344] ss:$16 sps:$4 sm:$0xff]  }
 0x15e   : > { %1624 = vmatprep.subr.bf16.mxu1 %v4404_v29  ;;  %v4480_v29 = vld [vmem:[#allocation8 + $0x340] ss:$16 sps:$4 sm:$0xff]  }
 0x15f   : > { %1584 = vmatpush1.bf16.msra.mxu0 %v4399_v31  ;;  %v4485_v31 = vld [vmem:[#allocation8 + $0x164] ss:$16 sps:$4 sm:$0xff]  }
 0x160   : > { %1585 = vmatprep.subr.bf16.mxu0 %v4407_v32  ;;  %v4483_v32 = vld [vmem:[#allocation8 + $0x160] ss:$16 sps:$4 sm:$0xff]  }
 0x161   : > { %1625 = vmatpush1.bf16.msra.mxu1 %v4402_v34  ;;  %v4488_v34 = vld [vmem:[#allocation8 + $0x364] ss:$16 sps:$4 sm:$0xff]  }
 0x162   : > { %1626 = vmatprep.subr.bf16.mxu1 %v4410_v38  ;;  %v4486_v38 = vld [vmem:[#allocation8 + $0x360] ss:$16 sps:$4 sm:$0xff]  }
 0x163   : > { %1586 = vmatpush1.bf16.msra.mxu0 %v4405_v36  ;;  %v4491_v36 = vld [vmem:[#allocation8 + $0x184] ss:$16 sps:$4 sm:$0xff]  }
 0x164   : > { %1587 = vmatprep.subr.bf16.mxu0 %v4413_v39  ;;  %v4489_v39 = vld [vmem:[#allocation8 + $0x180] ss:$16 sps:$4 sm:$0xff]  }
 0x165   : > { %1627 = vmatpush1.bf16.msra.mxu1 %v4408_v40  ;;  %v4494_v40 = vld [vmem:[#allocation8 + $0x384] ss:$16 sps:$4 sm:$0xff]  }
 0x166   : > { %1628 = vmatprep.subr.bf16.mxu1 %v4416_v42  ;;  %v4492_v42 = vld [vmem:[#allocation8 + $0x380] ss:$16 sps:$4 sm:$0xff]  }
 0x167   : > { %1588 = vmatpush1.bf16.msra.mxu0 %v4411_v41  ;;  %v4497_v41 = vld [vmem:[#allocation8 + $0x1a4] ss:$16 sps:$4 sm:$0xff]  }
 0x168   : > { %2279 = vmatprep.subr.bf16.mxu0 %v4419_v43  ;;  %v4495_v43 = vld [vmem:[#allocation8 + $0x1a0] ss:$16 sps:$4 sm:$0xff]  }
 0x169   : > { %1629 = vmatpush1.bf16.msra.mxu1 %v4414_v45  ;;  %v4500_v45 = vld [vmem:[#allocation8 + $0x3a4] ss:$16 sps:$4 sm:$0xff]  }
 0x16a   : > { %1590 = vmatmul.mubr.bf16.vlgmr.msra.gmra.mrb[4].mxu0 %v5666_v28  ;;  %2320 = vmatprep.subr.bf16.mxu1 %v4422_v47  ;;  %v4434_v28 = vld [vmem:[#allocation8 + $0x244] ss:$16 sps:$4 sm:$0xff]   ;;  %v4498_v47 = vld [vmem:[#allocation8 + $0x3a0] ss:$16 sps:$4 sm:$0xff]  }
 0x16b   : > { %2280 = vmatpush1.bf16.msra.mxu0 %v4417_v46  ;;  %3907 = vmatprep.mubr.msk.bf16.mxu0 %vm5606_vm14, %v5618_v44  ;;  %v4503_v46 = vld [vmem:[#allocation8 + $0x1c4] ss:$16 sps:$4 sm:$0xff]  }
 0x16c   : > { %2281 = vmatprep.subr.bf16.mxu0 %v4425_v48  ;;  %1631 = vmatmul.mubr.bf16.vlgmr.msra.gmra.mrb[4].mxu1 %v5671_v37  ;;  %v4443_v37 = vld [vmem:[#allocation8 + $0x84] ss:$16 sps:$4 sm:$0xff]   ;;  %v4501_v48 = vld [vmem:[#allocation8 + $0x1c0] ss:$16 sps:$4 sm:$0xff]  }
 0x16d   : > { %2321 = vmatpush1.bf16.msra.mxu1 %v4420_v50  ;;  %3909 = vmatprep.mubr.msk.bf16.mxu1 %vm5606_vm14, %v5632_v1  ;;  %v4506_v50 = vld [vmem:[#allocation8 + $0x3c4] ss:$16 sps:$4 sm:$0xff]  }
 0x16e   : > { %2322 = vmatprep.subr.bf16.mxu1 %v4428_v52  ;;  %v4504_v52 = vld [vmem:[#allocation8 + $0x3c0] ss:$16 sps:$4 sm:$0xff]  }
 0x16f   : > { %2282 = vmatpush1.bf16.msra.mxu0 %v4423_v51  ;;  %v4509_v51 = vld [vmem:[#allocation8 + $0x1e4] ss:$16 sps:$4 sm:$0xff]  }
 0x170   : > { %2283 = vmatprep.subr.bf16.mxu0 %v4431_v53  ;;  %v4507_v53 = vld [vmem:[#allocation8 + $0x1e0] ss:$16 sps:$4 sm:$0xff]  }
 0x171   : > { %2323 = vmatpush1.bf16.msra.mxu1 %v4426_v54  ;;  %v4512_v54 = vld [vmem:[#allocation8 + $0x3e4] ss:$16 sps:$4 sm:$0xff]  }
 0x172   : > { %2324 = vmatprep.subr.bf16.mxu1 %v4434_v28  ;;  %v4510_v28 = vld [vmem:[#allocation8 + $0x3e0] ss:$16 sps:$4 sm:$0xff]  }
 0x173   : > { %2284 = vmatpush1.bf16.msra.mxu0 %v4429_v55  ;;  %v4515_v55 = vld [vmem:[#allocation8 + $0xc] ss:$16 sps:$4 sm:$0xff]  }
 0x174   : > { %2285 = vmatprep.subr.bf16.mxu0 %v4437_v56  ;;  %v4513_v56 = vld [vmem:[#allocation8 + $0x8] ss:$16 sps:$4 sm:$0xff]  }
 0x175   : > { %2325 = vmatpush1.bf16.msra.mxu1 %v4432_v57  ;;  %v4518_v57 = vld [vmem:[#allocation8 + $0x20c] ss:$16 sps:$4 sm:$0xff]  }
 0x176   : > { %2326 = vmatprep.subr.bf16.mxu1 %v4440_v59  ;;  %v4516_v59 = vld [vmem:[#allocation8 + $0x208] ss:$16 sps:$4 sm:$0xff]  }
 0x177   : > { %2286 = vmatpush1.bf16.msra.mxu0 %v4435_v58  ;;  %v4521_v58 = vld [vmem:[#allocation8 + $0x2c] ss:$16 sps:$4 sm:$0xff]  }
 0x178   : > { %2287 = vmatprep.subr.bf16.mxu0 %v4443_v37  ;;  %v4519_v37 = vld [vmem:[#allocation8 + $0x28] ss:$16 sps:$4 sm:$0xff]  }
 0x179   : > { %2327 = vmatpush1.bf16.msra.mxu1 %v4438_v60  ;;  %v4524_v60 = vld [vmem:[#allocation8 + $0x22c] ss:$16 sps:$4 sm:$0xff]  }
 0x17a   : > { %2328 = vmatprep.subr.bf16.mxu1 %v4446_v62  ;;  %v4522_v62 = vld [vmem:[#allocation8 + $0x228] ss:$16 sps:$4 sm:$0xff]  }
 0x17b   : > { %2288 = vmatpush1.bf16.msra.mxu0 %v4441_v61  ;;  %v4527_v61 = vld [vmem:[#allocation8 + $0x4c] ss:$16 sps:$4 sm:$0xff]  }
 0x17c   : > { %2289 = vmatprep.subr.bf16.mxu0 %v4449_v63  ;;  %v4525_v63 = vld [vmem:[#allocation8 + $0x48] ss:$16 sps:$4 sm:$0xff]  }
 0x17d   : > { %2329 = vmatpush1.bf16.msra.mxu1 %v4444_v0  ;;  %v4530_v0 = vld [vmem:[#allocation8 + $0x24c] ss:$16 sps:$4 sm:$0xff]  }
 0x17e   : > { %2330 = vmatprep.subr.bf16.mxu1 %v4452_v3  ;;  %v4528_v3 = vld [vmem:[#allocation8 + $0x248] ss:$16 sps:$4 sm:$0xff]  }
 0x17f   : > { %2290 = vmatpush1.bf16.msra.mxu0 %v4447_v2  ;;  %v4533_v2 = vld [vmem:[#allocation8 + $0x6c] ss:$16 sps:$4 sm:$0xff]  }
 0x180   : > { %2291 = vmatprep.subr.bf16.mxu0 %v4455_v5  ;;  %v4531_v5 = vld [vmem:[#allocation8 + $0x68] ss:$16 sps:$4 sm:$0xff]  }
 0x181   : > { %2331 = vmatpush1.bf16.msra.mxu1 %v4450_v6  ;;  %v4539_v6 = vld [vmem:[#allocation8 + $0x8c] ss:$16 sps:$4 sm:$0xff]  }
 0x182   : > { %2332 = vmatprep.subr.bf16.mxu1 %v4458_v8  ;;  %v4537_v8 = vld [vmem:[#allocation8 + $0x88] ss:$16 sps:$4 sm:$0xff]  }
 0x183   : > { %2292 = vmatpush1.bf16.msra.mxu0 %v4453_v7  ;;  %v4534_v7 = vld [vmem:[#allocation8 + $0x268] ss:$16 sps:$4 sm:$0xff]  }
 0x184   : > { %2293 = vmatprep.subr.bf16.mxu0 %v4461_v9  ;;  %v4542_v9 = vld [vmem:[#allocation8 + $0x28c] ss:$16 sps:$4 sm:$0xff]  }
 0x185   : > { %2333 = vmatpush1.bf16.msra.mxu1 %v4456_v10  ;;  %v4540_v10 = vld [vmem:[#allocation8 + $0x288] ss:$16 sps:$4 sm:$0xff]  }
 0x186   : > { %2334 = vmatprep.subr.bf16.mxu1 %v4464_v14  ;;  %v4548_v14 = vld [vmem:[#allocation8 + $0x2ac] ss:$16 sps:$4 sm:$0xff]  }
 0x187   : > { %2294 = vmatpush1.bf16.msra.mxu0 %v4459_v12  ;;  %v4543_v12 = vld [vmem:[#allocation8 + $0xa8] ss:$16 sps:$4 sm:$0xff]  }
 0x188   : > { %2295 = vmatprep.subr.bf16.mxu0 %v4467_v15  ;;  %v4551_v15 = vld [vmem:[#allocation8 + $0xcc] ss:$16 sps:$4 sm:$0xff]  }
 0x189   : > { %2335 = vmatpush1.bf16.msra.mxu1 %v4462_v16  ;;  %v4546_v16 = vld [vmem:[#allocation8 + $0x2a8] ss:$16 sps:$4 sm:$0xff]  }
 0x18a   : > { %2336 = vmatprep.subr.bf16.mxu1 %v4470_v19  ;;  %v4554_v19 = vld [vmem:[#allocation8 + $0x2cc] ss:$16 sps:$4 sm:$0xff]  }
 0x18b   : > { %2296 = vmatpush1.bf16.msra.mxu0 %v4465_v17  ;;  %v4549_v17 = vld [vmem:[#allocation8 + $0xc8] ss:$16 sps:$4 sm:$0xff]  }
 0x18c   : > { %2297 = vmatprep.subr.bf16.mxu0 %v4473_v20  ;;  %v4557_v20 = vld [vmem:[#allocation8 + $0xec] ss:$16 sps:$4 sm:$0xff]  }
 0x18d   : > { %2337 = vmatpush1.bf16.msra.mxu1 %v4468_v21  ;;  %v4552_v21 = vld [vmem:[#allocation8 + $0x2c8] ss:$16 sps:$4 sm:$0xff]  }
 0x18e   : > { %2338 = vmatprep.subr.bf16.mxu1 %v4476_v23  ;;  %v4560_v23 = vld [vmem:[#allocation8 + $0x2ec] ss:$16 sps:$4 sm:$0xff]  }
 0x18f   : > { %2298 = vmatpush1.bf16.msra.mxu0 %v4471_v22  ;;  %v4555_v22 = vld [vmem:[#allocation8 + $0xe8] ss:$16 sps:$4 sm:$0xff]  }
 0x190   : > { %2299 = vmatprep.subr.bf16.mxu0 %v4479_v24  ;;  %v4563_v24 = vld [vmem:[#allocation8 + $0x10c] ss:$16 sps:$4 sm:$0xff]  }
 0x191   : > { %2339 = vmatpush1.bf16.msra.mxu1 %v4474_v26  ;;  %v4558_v26 = vld [vmem:[#allocation8 + $0x2e8] ss:$16 sps:$4 sm:$0xff]  }
 0x192   : > { %2340 = vmatprep.subr.bf16.mxu1 %v4482_v30  ;;  %v4566_v30 = vld [vmem:[#allocation8 + $0x30c] ss:$16 sps:$4 sm:$0xff]  }
 0x193   : > { %2300 = vmatpush1.bf16.msra.mxu0 %v4477_v18  ;;  %v4561_v18 = vld [vmem:[#allocation8 + $0x108] ss:$16 sps:$4 sm:$0xff]  }
 0x194   : > { %2301 = vmatprep.subr.bf16.mxu0 %v4485_v31  ;;  %v4569_v31 = vld [vmem:[#allocation8 + $0x12c] ss:$16 sps:$4 sm:$0xff]  }
 0x195   : > { %2341 = vmatpush1.bf16.msra.mxu1 %v4480_v29  ;;  %v4564_v29 = vld [vmem:[#allocation8 + $0x308] ss:$16 sps:$4 sm:$0xff]  }
 0x196   : > { %2342 = vmatprep.subr.bf16.mxu1 %v4488_v34  ;;  %v4572_v34 = vld [vmem:[#allocation8 + $0x32c] ss:$16 sps:$4 sm:$0xff]  }
 0x197   : > { %2302 = vmatpush1.bf16.msra.mxu0 %v4483_v32  ;;  %v4567_v32 = vld [vmem:[#allocation8 + $0x128] ss:$16 sps:$4 sm:$0xff]  }
 0x198   : > { %2303 = vmatprep.subr.bf16.mxu0 %v4491_v36  ;;  %v4575_v36 = vld [vmem:[#allocation8 + $0x14c] ss:$16 sps:$4 sm:$0xff]  }
 0x199   : > { %2343 = vmatpush1.bf16.msra.mxu1 %v4486_v38  ;;  %v4570_v38 = vld [vmem:[#allocation8 + $0x328] ss:$16 sps:$4 sm:$0xff]  }
 0x19a   : > { %2344 = vmatprep.subr.bf16.mxu1 %v4494_v40  ;;  %v4578_v40 = vld [vmem:[#allocation8 + $0x34c] ss:$16 sps:$4 sm:$0xff]  }
 0x19b   : > { %2304 = vmatpush1.bf16.msra.mxu0 %v4489_v39  ;;  %v4573_v39 = vld [vmem:[#allocation8 + $0x148] ss:$16 sps:$4 sm:$0xff]  }
 0x19c   : > { %2305 = vmatprep.subr.bf16.mxu0 %v4497_v41  ;;  %v4581_v41 = vld [vmem:[#allocation8 + $0x16c] ss:$16 sps:$4 sm:$0xff]  }
 0x19d   : > { %2345 = vmatpush1.bf16.msra.mxu1 %v4492_v42  ;;  %v4576_v42 = vld [vmem:[#allocation8 + $0x348] ss:$16 sps:$4 sm:$0xff]  }
 0x19e   : > { %2346 = vmatprep.subr.bf16.mxu1 %v4500_v45  ;;  %v4584_v45 = vld [vmem:[#allocation8 + $0x36c] ss:$16 sps:$4 sm:$0xff]  }
 0x19f   : > { %2306 = vmatpush1.bf16.msra.mxu0 %v4495_v43  ;;  %v4579_v43 = vld [vmem:[#allocation8 + $0x168] ss:$16 sps:$4 sm:$0xff]  }
 0x1a0   : > { %2307 = vmatprep.subr.bf16.mxu0 %v4503_v46  ;;  %v4587_v46 = vld [vmem:[#allocation8 + $0x18c] ss:$16 sps:$4 sm:$0xff]  }
 0x1a1   : > { %2347 = vmatpush1.bf16.msra.mxu1 %v4498_v47  ;;  %v4582_v47 = vld [vmem:[#allocation8 + $0x368] ss:$16 sps:$4 sm:$0xff]  }
 0x1a2   : > { %2348 = vmatprep.subr.bf16.mxu1 %v4506_v50  ;;  %v4590_v50 = vld [vmem:[#allocation8 + $0x38c] ss:$16 sps:$4 sm:$0xff]  }
 0x1a3   : > { %2308 = vmatpush1.bf16.msra.mxu0 %v4501_v48  ;;  %v4585_v48 = vld [vmem:[#allocation8 + $0x188] ss:$16 sps:$4 sm:$0xff]  }
 0x1a4   : > { %2309 = vmatprep.subr.bf16.mxu0 %v4509_v51  ;;  %v4593_v51 = vld [vmem:[#allocation8 + $0x1ac] ss:$16 sps:$4 sm:$0xff]  }
 0x1a5   : > { %2349 = vmatpush1.bf16.msra.mxu1 %v4504_v52  ;;  %v4588_v52 = vld [vmem:[#allocation8 + $0x388] ss:$16 sps:$4 sm:$0xff]  }
 0x1a6   : > { %2350 = vmatprep.subr.bf16.mxu1 %v4512_v54  ;;  %v4596_v54 = vld [vmem:[#allocation8 + $0x3ac] ss:$16 sps:$4 sm:$0xff]  }
 0x1a7   : > { %2310 = vmatpush1.bf16.msra.mxu0 %v4507_v53  ;;  %v4591_v53 = vld [vmem:[#allocation8 + $0x1a8] ss:$16 sps:$4 sm:$0xff]  }
 0x1a8   : > { %2361 = vmatprep.subr.bf16.mxu0 %v4515_v55  ;;  %v4599_v55 = vld [vmem:[#allocation8 + $0x1cc] ss:$16 sps:$4 sm:$0xff]  }
 0x1a9   : > { %2351 = vmatpush1.bf16.msra.mxu1 %v4510_v28  ;;  %v4594_v28 = vld [vmem:[#allocation8 + $0x3a8] ss:$16 sps:$4 sm:$0xff]  }
 0x1aa   : > { %3908 = vmatmul.mubr.msk.bf16.vlgmr.msra.gmra.mrb[8].mxu0 %vm5606_vm14, %v5646_v11  ;;  %2402 = vmatprep.subr.bf16.mxu1 %v4518_v57  ;;  %v4602_v57 = vld [vmem:[#allocation8 + $0x3cc] ss:$16 sps:$4 sm:$0xff]  }
 0x1ab   : > { %2362 = vmatpush1.bf16.msra.mxu0 %v4513_v56  ;;  %3911 = vmatprep.mubr.msk.bf16.mxu0 %vm5606_vm14, %v5618_v44  ;;  %v4536_v44 = vld [vmem:[#allocation8 + $0x26c] ss:$16 sps:$4 sm:$0xff]   ;;  %v4597_v56 = vld [vmem:[#allocation8 + $0x1c8] ss:$16 sps:$4 sm:$0xff]  }
 0x1ac   : > { %2363 = vmatprep.subr.bf16.mxu0 %v4521_v58  ;;  %3910 = vmatmul.mubr.msk.bf16.vlgmr.msra.gmra.mrb[8].mxu1 %vm5606_vm14, %v5659_v25  ;;  %v4605_v58 = vld [vmem:[#allocation8 + $0x1ec] ss:$16 sps:$4 sm:$0xff]  }
 0x1ad   : > { %2403 = vmatpush1.bf16.msra.mxu1 %v4516_v59  ;;  %3913 = vmatprep.mubr.msk.bf16.mxu1 %vm5606_vm14, %v5632_v1  ;;  %v4545_v1 = vld [vmem:[#allocation8 + $0xac] ss:$16 sps:$4 sm:$0xff]   ;;  %v4600_v59 = vld [vmem:[#allocation8 + $0x3c8] ss:$16 sps:$4 sm:$0xff]  }
 0x1ae   : > { %2404 = vmatprep.subr.bf16.mxu1 %v4524_v60  ;;  %v4608_v60 = vld [vmem:[#allocation8 + $0x3ec] ss:$16 sps:$4 sm:$0xff]  }
 0x1af   : > { %2364 = vmatpush1.bf16.msra.mxu0 %v4519_v37  ;;  %v4603_v37 = vld [vmem:[#allocation8 + $0x1e8] ss:$16 sps:$4 sm:$0xff]  }
 0x1b0   : > { %2365 = vmatprep.subr.bf16.mxu0 %v4527_v61  ;;  %v4611_v61 = vld [vmem:[#allocation8 + $0x804] ss:$16 sps:$4 sm:$0xff]  }
 0x1b1   : > { %2405 = vmatpush1.bf16.msra.mxu1 %v4522_v62  ;;  %v4606_v62 = vld [vmem:[#allocation8 + $0x3e8] ss:$16 sps:$4 sm:$0xff]  }
 0x1b2   : > { %2406 = vmatprep.subr.bf16.mxu1 %v4530_v0  ;;  %v4614_v0 = vld [vmem:[#allocation8 + $0xa04] ss:$16 sps:$4 sm:$0xff]  }
 0x1b3   : > { %2366 = vmatpush1.bf16.msra.mxu0 %v4525_v63  ;;  %v4609_v63 = vld [vmem:[#allocation8 + $0x800] ss:$16 sps:$4 sm:$0xff]  }
 0x1b4   : > { %2367 = vmatprep.subr.bf16.mxu0 %v4533_v2  ;;  %v4617_v2 = vld [vmem:[#allocation8 + $0x824] ss:$16 sps:$4 sm:$0xff]  }
 0x1b5   : > { %2407 = vmatpush1.bf16.msra.mxu1 %v4528_v3  ;;  %v2577_v3 = vrot.slane %v5623_v49, 1  ;;  %v4723_v49 = vld [vmem:[#allocation8 + $0x868] ss:$16 sps:$4 sm:$0xff]  }
 0x1b6   : > { %2408 = vmatprep.subr.bf16.mxu1 %v4536_v44  ;;  %v4615_v44 = vld [vmem:[#allocation8 + $0x820] ss:$16 sps:$4 sm:$0xff]  }
 0x1b7   : > { %2368 = vmatpush1.bf16.msra.mxu0 %v4531_v5  ;;  %v4612_v5 = vld [vmem:[#allocation8 + $0xa00] ss:$16 sps:$4 sm:$0xff]  }
 0x1b8   : > { %2369 = vmatprep.subr.bf16.mxu0 %v4539_v6  ;;  %v2579_v6 = vrot.slane %v5638_v4, 1  ;;  %v4729_v4 = vld [vmem:[#allocation8 + $0x888] ss:$16 sps:$4 sm:$0xff]  }
 0x1b9   : > { %2409 = vmatpush1.bf16.msra.mxu1 %v4534_v7  ;;  %v4620_v7 = vld [vmem:[#allocation8 + $0xa24] ss:$16 sps:$4 sm:$0xff]  }
 0x1ba   : > { %2410 = vmatprep.subr.bf16.mxu1 %v4542_v9  ;;  %v4618_v9 = vld [vmem:[#allocation8 + $0xa20] ss:$16 sps:$4 sm:$0xff]  }
 0x1bb   : > { %2370 = vmatpush1.bf16.msra.mxu0 %v4537_v8  ;;  %v4623_v8 = vld [vmem:[#allocation8 + $0x844] ss:$16 sps:$4 sm:$0xff]  }
 0x1bc   : > { %2371 = vmatprep.subr.bf16.mxu0 %v4545_v1  ;;  %v4626_v1 = vld [vmem:[#allocation8 + $0xa44] ss:$16 sps:$4 sm:$0xff]  }
 0x1bd   : > { %2411 = vmatpush1.bf16.msra.mxu1 %v4540_v10  ;;  %v4629_v10 = vld [vmem:[#allocation8 + $0x864] ss:$16 sps:$4 sm:$0xff]  }
 0x1be   : > { %2412 = vmatprep.subr.bf16.mxu1 %v4548_v14  ;;  %v4627_v14 = vld [vmem:[#allocation8 + $0x860] ss:$16 sps:$4 sm:$0xff]  }
 0x1bf   : > { %2372 = vmatpush1.bf16.msra.mxu0 %v4543_v12  ;;  %v4624_v12 = vld [vmem:[#allocation8 + $0xa40] ss:$16 sps:$4 sm:$0xff]  }
 0x1c0   : > { %2373 = vmatprep.subr.bf16.mxu0 %v4551_v15  ;;  %v4632_v15 = vld [vmem:[#allocation8 + $0xa64] ss:$16 sps:$4 sm:$0xff]  }
 0x1c1   : > { %2413 = vmatpush1.bf16.msra.mxu1 %v4546_v16  ;;  %v4633_v16 = vld [vmem:[#allocation8 + $0x880] ss:$16 sps:$4 sm:$0xff]  }
 0x1c2   : > { %2414 = vmatprep.subr.bf16.mxu1 %v4554_v19  ;;  %v4641_v19 = vld [vmem:[#allocation8 + $0x8a4] ss:$16 sps:$4 sm:$0xff]  }
 0x1c3   : > { %2374 = vmatpush1.bf16.msra.mxu0 %v4549_v17  ;;  %v4638_v17 = vld [vmem:[#allocation8 + $0xa84] ss:$16 sps:$4 sm:$0xff]  }
 0x1c4   : > { %2375 = vmatprep.subr.bf16.mxu0 %v4557_v20  ;;  %v4636_v20 = vld [vmem:[#allocation8 + $0xa80] ss:$16 sps:$4 sm:$0xff]  }
 0x1c5   : > { %2415 = vmatpush1.bf16.msra.mxu1 %v4552_v21  ;;  %v4639_v21 = vld [vmem:[#allocation8 + $0x8a0] ss:$16 sps:$4 sm:$0xff]  }
 0x1c6   : > { %2416 = vmatprep.subr.bf16.mxu1 %v4560_v23  ;;  %v4647_v23 = vld [vmem:[#allocation8 + $0x8c4] ss:$16 sps:$4 sm:$0xff]  }
 0x1c7   : > { %2376 = vmatpush1.bf16.msra.mxu0 %v4555_v22  ;;  %v4644_v22 = vld [vmem:[#allocation8 + $0xaa4] ss:$16 sps:$4 sm:$0xff]  }
 0x1c8   : > { %2377 = vmatprep.subr.bf16.mxu0 %v4563_v24 }
 0x1c9   : > { %2417 = vmatpush1.bf16.msra.mxu1 %v4558_v26 }
 0x1ca   : > { %2418 = vmatprep.subr.bf16.mxu1 %v4566_v30 }
 0x1cb   : > { %2378 = vmatpush1.bf16.msra.mxu0 %v4561_v18  ;;  %v4642_v18 = vld [vmem:[#allocation8 + $0xaa0] ss:$16 sps:$4 sm:$0xff]  }
 0x1cc   : > { %2379 = vmatprep.subr.bf16.mxu0 %v4569_v31  ;;  %v4645_v31 = vld [vmem:[#allocation8 + $0x8c0] ss:$16 sps:$4 sm:$0xff]  }
 0x1cd   : > { %2419 = vmatpush1.bf16.msra.mxu1 %v4564_v29  ;;  %v4650_v29 = vld [vmem:[#allocation8 + $0xac4] ss:$16 sps:$4 sm:$0xff]  }
 0x1ce   : > { %2420 = vmatprep.subr.bf16.mxu1 %v4572_v34 }
 0x1cf   : > { %2380 = vmatpush1.bf16.msra.mxu0 %v4567_v32 }
 0x1d0   : > { %2381 = vmatprep.subr.bf16.mxu0 %v4575_v36  ;;  %v4653_v36 = vld [vmem:[#allocation8 + $0x8e4] ss:$16 sps:$4 sm:$0xff]  }
 0x1d1   : > { %2421 = vmatpush1.bf16.msra.mxu1 %v4570_v38 }
 0x1d2   : > { %2422 = vmatprep.subr.bf16.mxu1 %v4578_v40 }
 0x1d3   : > { %2382 = vmatpush1.bf16.msra.mxu0 %v4573_v39 }
 0x1d4   : > { %2383 = vmatprep.subr.bf16.mxu0 %v4581_v41 }
 0x1d5   : > { %2423 = vmatpush1.bf16.msra.mxu1 %v4576_v42  ;;  %v4648_v42 = vld [vmem:[#allocation8 + $0xac0] ss:$16 sps:$4 sm:$0xff]  }
 0x1d6   : > { %2424 = vmatprep.subr.bf16.mxu1 %v4584_v45  ;;  %v4651_v45 = vld [vmem:[#allocation8 + $0x8e0] ss:$16 sps:$4 sm:$0xff]  }
 0x1d7   : > { %2384 = vmatpush1.bf16.msra.mxu0 %v4579_v43 }
 0x1d8   : > { %2385 = vmatprep.subr.bf16.mxu0 %v4587_v46  ;;  %v4656_v46 = vld [vmem:[#allocation8 + $0xae4] ss:$16 sps:$4 sm:$0xff]  }
 0x1d9   : > { %2425 = vmatpush1.bf16.msra.mxu1 %v4582_v47  ;;  %v4659_v47 = vld [vmem:[#allocation8 + $0x904] ss:$16 sps:$4 sm:$0xff]  }
 0x1da   : > { %2426 = vmatprep.subr.bf16.mxu1 %v4590_v50  ;;  %v4657_v50 = vld [vmem:[#allocation8 + $0x900] ss:$16 sps:$4 sm:$0xff]  }
 0x1db   : > { %2386 = vmatpush1.bf16.msra.mxu0 %v4585_v48  ;;  %v4654_v48 = vld [vmem:[#allocation8 + $0xae0] ss:$16 sps:$4 sm:$0xff]  }
 0x1dc   : > { %2387 = vmatprep.subr.bf16.mxu0 %v4593_v51  ;;  %v4662_v51 = vld [vmem:[#allocation8 + $0xb04] ss:$16 sps:$4 sm:$0xff]  }
 0x1dd   : > { %2427 = vmatpush1.bf16.msra.mxu1 %v4588_v52  ;;  %v4665_v52 = vld [vmem:[#allocation8 + $0x924] ss:$16 sps:$4 sm:$0xff]  }
 0x1de   : > { %2428 = vmatprep.subr.bf16.mxu1 %v4596_v54  ;;  %v4663_v54 = vld [vmem:[#allocation8 + $0x920] ss:$16 sps:$4 sm:$0xff]  }
 0x1df   : > { %2388 = vmatpush1.bf16.msra.mxu0 %v4591_v53  ;;  %v4660_v53 = vld [vmem:[#allocation8 + $0xb00] ss:$16 sps:$4 sm:$0xff]  }
 0x1e0   : > { %2389 = vmatprep.subr.bf16.mxu0 %v4599_v55  ;;  %v4668_v55 = vld [vmem:[#allocation8 + $0xb24] ss:$16 sps:$4 sm:$0xff]  }
 0x1e1   : > { %2429 = vmatpush1.bf16.msra.mxu1 %v4594_v28  ;;  %v4671_v28 = vld [vmem:[#allocation8 + $0x944] ss:$16 sps:$4 sm:$0xff]  }
 0x1e2   : > { %2430 = vmatprep.subr.bf16.mxu1 %v4602_v57  ;;  %v4669_v57 = vld [vmem:[#allocation8 + $0x940] ss:$16 sps:$4 sm:$0xff]  }
 0x1e3   : > { %2390 = vmatpush1.bf16.msra.mxu0 %v4597_v56  ;;  %v4666_v56 = vld [vmem:[#allocation8 + $0xb20] ss:$16 sps:$4 sm:$0xff]  }
 0x1e4   : > { %2391 = vmatprep.subr.bf16.mxu0 %v4605_v58  ;;  %v4674_v58 = vld [vmem:[#allocation8 + $0xb44] ss:$16 sps:$4 sm:$0xff]  }
 0x1e5   : > { %2431 = vmatpush1.bf16.msra.mxu1 %v4600_v59  ;;  %v4677_v59 = vld [vmem:[#allocation8 + $0x964] ss:$16 sps:$4 sm:$0xff]  }
 0x1e6   : > { %2432 = vmatprep.subr.bf16.mxu1 %v4608_v60  ;;  %v4675_v60 = vld [vmem:[#allocation8 + $0x960] ss:$16 sps:$4 sm:$0xff]  }
 0x1e7   : > { %2392 = vmatpush1.bf16.msra.mxu0 %v4603_v37  ;;  %v4672_v37 = vld [vmem:[#allocation8 + $0xb40] ss:$16 sps:$4 sm:$0xff]  }
 0x1e8   : > { %3224 = vmatprep.subr.bf16.mxu0 %v4611_v61  ;;  %v4680_v61 = vld [vmem:[#allocation8 + $0xb64] ss:$16 sps:$4 sm:$0xff]  }
 0x1e9   : > { %2433 = vmatpush1.bf16.msra.mxu1 %v4606_v62  ;;  %v4683_v62 = vld [vmem:[#allocation8 + $0x984] ss:$16 sps:$4 sm:$0xff]  }
 0x1ea   : > { %3912 = vmatmul.mubr.msk.bf16.vlgmr.msra.gmra.mrb[12].mxu0 %vm5606_vm14, %v5646_v11  ;;  %3265 = vmatprep.subr.bf16.mxu1 %v4614_v0  ;;  %v4621_v11 = vld [vmem:[#allocation8 + $0x840] ss:$16 sps:$4 sm:$0xff]  }
 0x1eb   : > { %3225 = vmatpush1.bf16.msra.mxu0 %v4609_v63  ;;  %3256 = vmatprep.mubr.bf16.mxu0 %v2577_v3  ;;  %v4678_v63 = vld [vmem:[#allocation8 + $0xb60] ss:$16 sps:$4 sm:$0xff]  }
 0x1ec   : > { %3226 = vmatprep.subr.bf16.mxu0 %v4617_v2  ;;  %3914 = vmatmul.mubr.msk.bf16.vlgmr.msra.gmra.mrb[12].mxu1 %vm5606_vm14, %v5659_v25  ;;  %v4630_v25 = vld [vmem:[#allocation8 + $0xa60] ss:$16 sps:$4 sm:$0xff]   ;;  %v4686_v2 = vld [vmem:[#allocation8 + $0xb84] ss:$16 sps:$4 sm:$0xff]  }
 0x1ed   : > { %3266 = vmatpush1.bf16.msra.mxu1 %v4612_v5  ;;  %3297 = vmatprep.mubr.bf16.mxu1 %v2579_v6  ;;  %v4681_v0 = vld [vmem:[#allocation8 + $0x980] ss:$16 sps:$4 sm:$0xff]   ;;  %v4689_v5 = vld [vmem:[#allocation8 + $0x9a4] ss:$16 sps:$4 sm:$0xff]  }
 0x1ee   : > { %3267 = vmatprep.subr.bf16.mxu1 %v4620_v7  ;;  %v4687_v7 = vld [vmem:[#allocation8 + $0x9a0] ss:$16 sps:$4 sm:$0xff]  }
 0x1ef   : > { %3227 = vmatpush1.bf16.msra.mxu0 %v4615_v44  ;;  %v4684_v44 = vld [vmem:[#allocation8 + $0xb80] ss:$16 sps:$4 sm:$0xff]  }
 0x1f0   : > { %3228 = vmatprep.subr.bf16.mxu0 %v4623_v8  ;;  %v4692_v8 = vld [vmem:[#allocation8 + $0xba4] ss:$16 sps:$4 sm:$0xff]  }
 0x1f1   : > { %3268 = vmatpush1.bf16.msra.mxu1 %v4618_v9  ;;  %v4695_v9 = vld [vmem:[#allocation8 + $0x9c4] ss:$16 sps:$4 sm:$0xff]  }
 0x1f2   : > { %3269 = vmatprep.subr.bf16.mxu1 %v4626_v1  ;;  %v4693_v1 = vld [vmem:[#allocation8 + $0x9c0] ss:$16 sps:$4 sm:$0xff]  }
 0x1f3   : > { %3229 = vmatpush1.bf16.msra.mxu0 %v4621_v11  ;;  %v4690_v11 = vld [vmem:[#allocation8 + $0xba0] ss:$16 sps:$4 sm:$0xff]  }
 0x1f4   : > { %3230 = vmatprep.subr.bf16.mxu0 %v4629_v10  ;;  %v4698_v10 = vld [vmem:[#allocation8 + $0xbc4] ss:$16 sps:$4 sm:$0xff]  }
 0x1f5   : > { %3270 = vmatpush1.bf16.msra.mxu1 %v4624_v12  ;;  %v4701_v12 = vld [vmem:[#allocation8 + $0x9e4] ss:$16 sps:$4 sm:$0xff]  }
 0x1f6   : > { %3271 = vmatprep.subr.bf16.mxu1 %v4632_v15  ;;  %v4699_v15 = vld [vmem:[#allocation8 + $0x9e0] ss:$16 sps:$4 sm:$0xff]  }
 0x1f7   : > { %3231 = vmatpush1.bf16.msra.mxu0 %v4627_v14  ;;  %v4696_v14 = vld [vmem:[#allocation8 + $0xbc0] ss:$16 sps:$4 sm:$0xff]  }
 0x1f8   : > { %3232 = vmatprep.subr.bf16.mxu0 %v4635_v33  ;;  %v4704_v33 = vld [vmem:[#allocation8 + $0xbe4] ss:$16 sps:$4 sm:$0xff]  }
 0x1f9   : > { %3272 = vmatpush1.bf16.msra.mxu1 %v4630_v25  ;;  %v4707_v25 = vld [vmem:[#allocation8 + $0x80c] ss:$16 sps:$4 sm:$0xff]  }
 0x1fa   : > { %3273 = vmatprep.subr.bf16.mxu1 %v4638_v17  ;;  %v2576_v17 = vrot.slane %v5651_v13, 1 }
 0x1fb   : > { %3233 = vmatpush1.bf16.msra.mxu0 %v4633_v16  ;;  %v4702_v16 = vld [vmem:[#allocation8 + $0xbe0] ss:$16 sps:$4 sm:$0xff]  }
 0x1fc   : > { %3234 = vmatprep.subr.bf16.mxu0 %v4641_v19  ;;  %v4705_v19 = vld [vmem:[#allocation8 + $0x808] ss:$16 sps:$4 sm:$0xff]  }
 0x1fd   : > { %v1509_v24 = vpop.f32.mrb[0].mxu0  ;;  %3274 = vmatpush1.bf16.msra.mxu1 %v4636_v20  ;;  %v4710_v20 = vld [vmem:[#allocation8 + $0xa0c] ss:$16 sps:$4 sm:$0xff]  }
 0x1fe   : > { %v1511_v26 = vpop.f32.mrb[1].mxu0  ;;  %3275 = vmatprep.subr.bf16.mxu1 %v4644_v22  ;;  %v2578_v22 = vrot.slane %v5664_v27, 1 }
 0x1ff   : > { %v1513_v30 = vpop.f32.mrb[2].mxu0  ;;  %3235 = vmatpush1.bf16.msra.mxu0 %v4639_v21  ;;  %v1550_v32 = vpop.f32.mrb[0].mxu1  ;;  %v4713_v21 = vld [vmem:[#allocation8 + $0x82c] ss:$16 sps:$4 sm:$0xff]  }
 0x200   : > { %v1514_v34 = vpop.f32.mrb[3].mxu0  ;;  %3236 = vmatprep.subr.bf16.mxu0 %v4647_v23  ;;  %v5706_v38 = vadd.f32 %v1550_v32, %v1509_v24  ;;  %v1552_v39 = vpop.f32.mrb[1].mxu1  ;;  %v4708_v23 = vld [vmem:[#allocation8 + $0xa08] ss:$16 sps:$4 sm:$0xff]   ;;  %v4725_v32 = vld [vmem:[#allocation8 + $0x86c] ss:$16 sps:$4 sm:$0xff]  }
 0x201   : > { %v5708_v40 = vadd.f32 %v1552_v39, %v1511_v26  ;;  %v1554_v41 = vpop.f32.mrb[2].mxu1  ;;  %3276 = vmatpush1.bf16.msra.mxu1 %v4642_v18  ;;  %v4711_v24 = vld [vmem:[#allocation8 + $0x828] ss:$16 sps:$4 sm:$0xff]   ;;  %v4716_v26 = vld [vmem:[#allocation8 + $0xa2c] ss:$16 sps:$4 sm:$0xff]  }
 0x202   : > { %v1555_v43 = vpop.f32.mrb[3].mxu1  ;;  %3277 = vmatprep.subr.bf16.mxu1 %v4650_v29  ;;  %v4719_v18 = vld [vmem:[#allocation8 + $0x84c] ss:$16 sps:$4 sm:$0xff]   ;;  %v4714_v30 = vld [vmem:[#allocation8 + $0xa28] ss:$16 sps:$4 sm:$0xff]  }
 0x203   : > { %3237 = vmatpush1.bf16.msra.mxu0 %v4645_v31  ;;  %v4717_v31 = vld [vmem:[#allocation8 + $0x848] ss:$16 sps:$4 sm:$0xff]   ;;  %v4722_v29 = vld [vmem:[#allocation8 + $0xa4c] ss:$16 sps:$4 sm:$0xff]  }
 0x204   : > { %3238 = vmatprep.subr.bf16.mxu0 %v4653_v36  ;;  %v4720_v34 = vld [vmem:[#allocation8 + $0xa48] ss:$16 sps:$4 sm:$0xff]   ;;  %v4731_v36 = vld [vmem:[#allocation8 + $0x88c] ss:$16 sps:$4 sm:$0xff]  }
 0x205   : > { %3278 = vmatpush1.bf16.msra.mxu1 %v4648_v42  ;;  %v4726_v39 = vld [vmem:[#allocation8 + $0xa68] ss:$16 sps:$4 sm:$0xff]   ;;  %v4737_v41 = vld [vmem:[#allocation8 + $0x8ac] ss:$16 sps:$4 sm:$0xff]  }
 0x206   : > { %3279 = vmatprep.subr.bf16.mxu1 %v4656_v46  ;;  %v4732_v42 = vld [vmem:[#allocation8 + $0xa88] ss:$16 sps:$4 sm:$0xff]   ;;  %v4743_v46 = vld [vmem:[#allocation8 + $0x8cc] ss:$16 sps:$4 sm:$0xff]  }
 0x207   : > { %3239 = vmatpush1.bf16.msra.mxu0 %v4651_v45  ;;  %v4735_v43 = vld [vmem:[#allocation8 + $0x8a8] ss:$16 sps:$4 sm:$0xff]   ;;  %v4740_v45 = vld [vmem:[#allocation8 + $0xaac] ss:$16 sps:$4 sm:$0xff]  }
 0x208   : > { %3240 = vmatprep.subr.bf16.mxu0 %v4659_v47 }
 0x209   : > { %3280 = vmatpush1.bf16.msra.mxu1 %v4654_v48 }
 0x20a   : > { %3281 = vmatprep.subr.bf16.mxu1 %v4662_v51 }
 0x20b   : > { %3241 = vmatpush1.bf16.msra.mxu0 %v4657_v50  ;;  %v4738_v50 = vld [vmem:[#allocation8 + $0xaa8] ss:$16 sps:$4 sm:$0xff]  }
 0x20c   : > { %3242 = vmatprep.subr.bf16.mxu0 %v4665_v52  ;;  %v4741_v52 = vld [vmem:[#allocation8 + $0x8c8] ss:$16 sps:$4 sm:$0xff]  }
 0x20d   : > { %3282 = vmatpush1.bf16.msra.mxu1 %v4660_v53  ;;  %v4746_v53 = vld [vmem:[#allocation8 + $0xacc] ss:$16 sps:$4 sm:$0xff]  }
 0x20e   : > { %3283 = vmatprep.subr.bf16.mxu1 %v4668_v55 }
 0x20f   : > { %3243 = vmatpush1.bf16.msra.mxu0 %v4663_v54 }
 0x210   : > { %3244 = vmatprep.subr.bf16.mxu0 %v4671_v28  ;;  %v4749_v28 = vld [vmem:[#allocation8 + $0x8ec] ss:$16 sps:$4 sm:$0xff]  }
 0x211   : > { %3284 = vmatpush1.bf16.msra.mxu1 %v4666_v56 }
 0x212   : > { %3285 = vmatprep.subr.bf16.mxu1 %v4674_v58 }
 0x213   : > { %3245 = vmatpush1.bf16.msra.mxu0 %v4669_v57 }
 0x214   : > { %3246 = vmatprep.subr.bf16.mxu0 %v4677_v59 }
 0x215   : > { %3286 = vmatpush1.bf16.msra.mxu1 %v4672_v37  ;;  %v4744_v37 = vld [vmem:[#allocation8 + $0xac8] ss:$16 sps:$4 sm:$0xff]  }
 0x216   : > { %3287 = vmatprep.subr.bf16.mxu1 %v4680_v61  ;;  %v4747_v61 = vld [vmem:[#allocation8 + $0x8e8] ss:$16 sps:$4 sm:$0xff]  }
 0x217   : > { %3247 = vmatpush1.bf16.msra.mxu0 %v4675_v60 }
 0x218   : > { %3248 = vmatprep.subr.bf16.mxu0 %v4683_v62  ;;  %v4752_v62 = vld [vmem:[#allocation8 + $0xaec] ss:$16 sps:$4 sm:$0xff]  }
 0x219   : > { %3288 = vmatpush1.bf16.msra.mxu1 %v4678_v63  ;;  %v4755_v63 = vld [vmem:[#allocation8 + $0x90c] ss:$16 sps:$4 sm:$0xff]  }
 0x21a   : > { %3289 = vmatprep.subr.bf16.mxu1 %v4686_v2  ;;  %v4753_v2 = vld [vmem:[#allocation8 + $0x908] ss:$16 sps:$4 sm:$0xff]  }
 0x21b   : > { %3249 = vmatpush1.bf16.msra.mxu0 %v4681_v0  ;;  %v4750_v0 = vld [vmem:[#allocation8 + $0xae8] ss:$16 sps:$4 sm:$0xff]  }
 0x21c   : > { %3250 = vmatprep.subr.bf16.mxu0 %v4689_v5  ;;  %v4758_v5 = vld [vmem:[#allocation8 + $0xb0c] ss:$16 sps:$4 sm:$0xff]  }
 0x21d   : > { %3290 = vmatpush1.bf16.msra.mxu1 %v4684_v44  ;;  %v4761_v44 = vld [vmem:[#allocation8 + $0x92c] ss:$16 sps:$4 sm:$0xff]  }
 0x21e   : > { %3291 = vmatprep.subr.bf16.mxu1 %v4692_v8  ;;  %v4759_v8 = vld [vmem:[#allocation8 + $0x928] ss:$16 sps:$4 sm:$0xff]  }
 0x21f   : > { %3251 = vmatpush1.bf16.msra.mxu0 %v4687_v7  ;;  %v4756_v7 = vld [vmem:[#allocation8 + $0xb08] ss:$16 sps:$4 sm:$0xff]  }
 0x220   : > { %3252 = vmatprep.subr.bf16.mxu0 %v4695_v9  ;;  %v4764_v9 = vld [vmem:[#allocation8 + $0xb2c] ss:$16 sps:$4 sm:$0xff]  }
 0x221   : > { %3292 = vmatpush1.bf16.msra.mxu1 %v4690_v11  ;;  %v4767_v11 = vld [vmem:[#allocation8 + $0x94c] ss:$16 sps:$4 sm:$0xff]  }
 0x222   : > { %3293 = vmatprep.subr.bf16.mxu1 %v4698_v10  ;;  %v4765_v10 = vld [vmem:[#allocation8 + $0x948] ss:$16 sps:$4 sm:$0xff]  }
 0x223   : > { %3253 = vmatpush1.bf16.msra.mxu0 %v4693_v1  ;;  %v4762_v1 = vld [vmem:[#allocation8 + $0xb28] ss:$16 sps:$4 sm:$0xff]  }
 0x224   : > { %3254 = vmatprep.subr.bf16.mxu0 %v4701_v12  ;;  %v4770_v12 = vld [vmem:[#allocation8 + $0xb4c] ss:$16 sps:$4 sm:$0xff]  }
 0x225   : > { %3294 = vmatpush1.bf16.msra.mxu1 %v4696_v14  ;;  %v4773_v14 = vld [vmem:[#allocation8 + $0x96c] ss:$16 sps:$4 sm:$0xff]  }
 0x226   : > { %3295 = vmatprep.subr.bf16.mxu1 %v4704_v33  ;;  %v4771_v33 = vld [vmem:[#allocation8 + $0x968] ss:$16 sps:$4 sm:$0xff]  }
 0x227   : > { %3255 = vmatpush1.bf16.msra.mxu0 %v4699_v15  ;;  %v4768_v15 = vld [vmem:[#allocation8 + $0xb48] ss:$16 sps:$4 sm:$0xff]  }
 0x228   : > { %3306 = vmatprep.subr.bf16.mxu0 %v4707_v25  ;;  %v4776_v25 = vld [vmem:[#allocation8 + $0xb6c] ss:$16 sps:$4 sm:$0xff]  }
 0x229   : > { %3296 = vmatpush1.bf16.msra.mxu1 %v4702_v16  ;;  %v4779_v16 = vld [vmem:[#allocation8 + $0x98c] ss:$16 sps:$4 sm:$0xff]  }
 0x22a   : > { %3257 = vmatmul.mubr.bf16.vlgmr.msra.gmra.mrb[16].mxu0 %v2576_v17  ;;  %3347 = vmatprep.subr.bf16.mxu1 %v4710_v20  ;;  %v4777_v20 = vld [vmem:[#allocation8 + $0x988] ss:$16 sps:$4 sm:$0xff]  }
 0x22b   : > { %3307 = vmatpush1.bf16.msra.mxu0 %v4705_v19  ;;  %3338 = vmatprep.mubr.bf16.mxu0 %v2577_v3  ;;  %v4728_v3 = vld [vmem:[#allocation8 + $0xa6c] ss:$16 sps:$4 sm:$0xff]   ;;  %v4774_v19 = vld [vmem:[#allocation8 + $0xb68] ss:$16 sps:$4 sm:$0xff]  }
 0x22c   : > { %3308 = vmatprep.subr.bf16.mxu0 %v4713_v21  ;;  %3298 = vmatmul.mubr.bf16.vlgmr.msra.gmra.mrb[16].mxu1 %v2578_v22  ;;  %v4782_v21 = vld [vmem:[#allocation8 + $0xb8c] ss:$16 sps:$4 sm:$0xff]  }
 0x22d   : > { %3348 = vmatpush1.bf16.msra.mxu1 %v4708_v23  ;;  %3379 = vmatprep.mubr.bf16.mxu1 %v2579_v6  ;;  %v4734_v6 = vld [vmem:[#allocation8 + $0xa8c] ss:$16 sps:$4 sm:$0xff]  }
 0x22e   : > { %3349 = vmatprep.subr.bf16.mxu1 %v4716_v26  ;;  %v4785_v23 = vld [vmem:[#allocation8 + $0x9ac] ss:$16 sps:$4 sm:$0xff]   ;;  %v4783_v26 = vld [vmem:[#allocation8 + $0x9a8] ss:$16 sps:$4 sm:$0xff]  }
 0x22f   : > { %3309 = vmatpush1.bf16.msra.mxu0 %v4711_v24  ;;  %v4780_v24 = vld [vmem:[#allocation8 + $0xb88] ss:$16 sps:$4 sm:$0xff]  }
 0x230   : > { %3310 = vmatprep.subr.bf16.mxu0 %v4719_v18  ;;  %v4788_v18 = vld [vmem:[#allocation8 + $0xbac] ss:$16 sps:$4 sm:$0xff]  }
 0x231   : > { %3350 = vmatpush1.bf16.msra.mxu1 %v4714_v30  ;;  %v4791_v30 = vld [vmem:[#allocation8 + $0x9cc] ss:$16 sps:$4 sm:$0xff]  }
 0x232   : > { %3351 = vmatprep.subr.bf16.mxu1 %v4722_v29  ;;  %v4789_v29 = vld [vmem:[#allocation8 + $0x9c8] ss:$16 sps:$4 sm:$0xff]  }
 0x233   : > { %3311 = vmatpush1.bf16.msra.mxu0 %v4717_v31  ;;  %v4786_v31 = vld [vmem:[#allocation8 + $0xba8] ss:$16 sps:$4 sm:$0xff]  }
 0x234   : > { %3312 = vmatprep.subr.bf16.mxu0 %v4725_v32  ;;  %v4794_v32 = vld [vmem:[#allocation8 + $0xbcc] ss:$16 sps:$4 sm:$0xff]  }
 0x235   : > { %3352 = vmatpush1.bf16.msra.mxu1 %v4720_v34  ;;  %v4797_v34 = vld [vmem:[#allocation8 + $0x9ec] ss:$16 sps:$4 sm:$0xff]  }
 0x236   : > { %3353 = vmatprep.subr.bf16.mxu1 %v4728_v3  ;;  %v4795_v3 = vld [vmem:[#allocation8 + $0x9e8] ss:$16 sps:$4 sm:$0xff]  }
 0x237   : > { %3313 = vmatpush1.bf16.msra.mxu0 %v4723_v49  ;;  %v4792_v49 = vld [vmem:[#allocation8 + $0xbc8] ss:$16 sps:$4 sm:$0xff]  }
 0x238   : > { %3314 = vmatprep.subr.bf16.mxu0 %v4731_v36  ;;  %v4800_v36 = vld [vmem:[#allocation8 + $0xbec] ss:$16 sps:$4 sm:$0xff]  }
 0x239   : > { %3354 = vmatpush1.bf16.msra.mxu1 %v4726_v39  ;;  %v4798_v39 = vld [vmem:[#allocation8 + $0xbe8] ss:$16 sps:$4 sm:$0xff]  }
 0x23a   : > { %3355 = vmatprep.subr.bf16.mxu1 %v4734_v6 }
 0x23b   : > { %3315 = vmatpush1.bf16.msra.mxu0 %v4729_v4 }
 0x23c   : > { %3316 = vmatprep.subr.bf16.mxu0 %v4737_v41 }
 0x23d   : > { %v1591_v47 = vpop.f32.mrb[4].mxu0  ;;  %3356 = vmatpush1.bf16.msra.mxu1 %v4732_v42 }
 0x23e   : > { %v1593_v48 = vpop.f32.mrb[5].mxu0  ;;  %3357 = vmatprep.subr.bf16.mxu1 %v4740_v45 }
 0x23f   : > { %v1595_v51 = vpop.f32.mrb[6].mxu0  ;;  %3317 = vmatpush1.bf16.msra.mxu0 %v4735_v43  ;;  %v1632_v54 = vpop.f32.mrb[4].mxu1 }
 0x240   : > { %v1596_v55 = vpop.f32.mrb[7].mxu0  ;;  %3318 = vmatprep.subr.bf16.mxu0 %v4743_v46  ;;  %v5720_v56 = vadd.f32 %v1632_v54, %v1591_v47  ;;  %v1634_v57 = vpop.f32.mrb[5].mxu1 }
 0x241   : > { %v5722_v58 = vadd.f32 %v1634_v57, %v1593_v48  ;;  %v1636_v59 = vpop.f32.mrb[6].mxu1  ;;  %3358 = vmatpush1.bf16.msra.mxu1 %v4738_v50 }
 0x242   : > { %v1637_v60 = vpop.f32.mrb[7].mxu1  ;;  %3359 = vmatprep.subr.bf16.mxu1 %v4746_v53 }
 0x243   : > { %3319 = vmatpush1.bf16.msra.mxu0 %v4741_v52  ;;  %v3396_v60 = vsub.s32 0, %v5546_v35 }
 0x244   : > { %3320 = vmatprep.subr.bf16.mxu0 %v4749_v28 }
 0x245   : > { %3360 = vmatpush1.bf16.msra.mxu1 %v4744_v37 }
 0x246   : > { %3361 = vmatprep.subr.bf16.mxu1 %v4752_v62 }
 0x247   : > { %3321 = vmatpush1.bf16.msra.mxu0 %v4747_v61  ;;  %v3392_v61 = vld [vmem:[#allocation10] sm:$0xf] }
 0x248   : > { %3322 = vmatprep.subr.bf16.mxu0 %v4755_v63  ;;  %v3400_v63 = vsub.s32 1, %v5546_v35 }
 0x249   : > { %3362 = vmatpush1.bf16.msra.mxu1 %v4750_v0 }
 0x24a   : > { %3363 = vmatprep.subr.bf16.mxu1 %v4758_v5  ;;  %v3397_v5 = vrot.slane %v3392_v61, %v3396_v60 }
 0x24b   : > { %3323 = vmatpush1.bf16.msra.mxu0 %v4753_v2 }
 0x24c   : > { %3324 = vmatprep.subr.bf16.mxu0 %v4761_v44 }
 0x24d   : > { %3364 = vmatpush1.bf16.msra.mxu1 %v4756_v7 }
 0x24e   : > { %3365 = vmatprep.subr.bf16.mxu1 %v4764_v9 }
 0x24f   : > { %3325 = vmatpush1.bf16.msra.mxu0 %v4759_v8  ;;  %v3401_v8 = vrot.slane %v3392_v61, %v3400_v63 }
 0x250   : > { %3326 = vmatprep.subr.bf16.mxu0 %v4767_v11 }
 0x251   : > { %3366 = vmatpush1.bf16.msra.mxu1 %v4762_v1 }
 0x252   : > { %3367 = vmatprep.subr.bf16.mxu1 %v4770_v12 }
 0x253   : > { %3327 = vmatpush1.bf16.msra.mxu0 %v4765_v10 }
 0x254   : > { %3328 = vmatprep.subr.bf16.mxu0 %v4773_v14 }
 0x255   : > { %3368 = vmatpush1.bf16.msra.mxu1 %v4768_v15 }
 0x256   : > { %3369 = vmatprep.subr.bf16.mxu1 %v4776_v25  ;;  %v3404_v25 = vsub.s32 2, %v5546_v35 }
 0x257   : > { %3329 = vmatpush1.bf16.msra.mxu0 %v4771_v33 }
 0x258   : > { %3330 = vmatprep.subr.bf16.mxu0 %v4779_v16 }
 0x259   : > { %3370 = vmatpush1.bf16.msra.mxu1 %v4774_v19  ;;  %v3408_v19 = vsub.s32 3, %v5546_v35 }
 0x25a   : > { %3371 = vmatprep.subr.bf16.mxu1 %v4782_v21 }
 0x25b   : > { %3331 = vmatpush1.bf16.msra.mxu0 %v4777_v20 }
 0x25c   : > { %3332 = vmatprep.subr.bf16.mxu0 %v4785_v23 }
 0x25d   : > { %3372 = vmatpush1.bf16.msra.mxu1 %v4780_v24 }
 0x25e   : > { %3373 = vmatprep.subr.bf16.mxu1 %v4788_v18 }
 0x25f   : > { %3333 = vmatpush1.bf16.msra.mxu0 %v4783_v26  ;;  %v3405_v26 = vrot.slane %v3392_v61, %v3404_v25 }
 0x260   : > { %3334 = vmatprep.subr.bf16.mxu0 %v4791_v30 }
 0x261   : > { %3374 = vmatpush1.bf16.msra.mxu1 %v4786_v31  ;;  %v3409_v31 = vrot.slane %v3392_v61, %v3408_v19 }
 0x262   : > { %3375 = vmatprep.subr.bf16.mxu1 %v4794_v32 }
 0x263   : > { %3335 = vmatpush1.bf16.msra.mxu0 %v4789_v29 }
 0x264   : > { %3336 = vmatprep.subr.bf16.mxu0 %v4797_v34 }
 0x265   : > { %3376 = vmatpush1.bf16.msra.mxu1 %v4792_v49 }
 0x266   : > { %3377 = vmatprep.subr.bf16.mxu1 %v4800_v36 }
 0x267   : > { %3337 = vmatpush1.bf16.msra.mxu0 %v4795_v3 }
 0x269   : > { %3378 = vmatpush1.bf16.msra.mxu1 %v4798_v39 }
 0x26a   : > { %3339 = vmatmul.mubr.bf16.vlgmr.msra.gmra.mrb[20].mxu0 %v2576_v17 }
 0x26c   : > { %3380 = vmatmul.mubr.bf16.vlgmr.msra.gmra.mrb[20].mxu1 %v2578_v22 }
 0x27d   : > { %v2313_v4 = vpop.f32.mrb[8].mxu0 }
 0x27e   : > { %v2314_v6 = vadd.f32 %v2313_v4, %v5706_v38  ;;  %v2315_v41 = vpop.f32.mrb[9].mxu0 }
 0x27f   : > { %v2316_v42 = vadd.f32 %v2315_v41, %v5708_v40  ;;  %v2317_v43 = vpop.f32.mrb[10].mxu0  ;;  %v2354_v45 = vpop.f32.mrb[8].mxu1 }
 0x280   : > { %v2318_v46 = vpop.f32.mrb[11].mxu0  ;;  %v2355_v47 = vadd.f32 %v2354_v45, %v2314_v6  ;;  %v2356_v48 = vpop.f32.mrb[9].mxu1 }
 0x281   : > { %v2357_v50 = vadd.f32 %v2356_v48, %v2316_v42  ;;  %v2358_v51 = vpop.f32.mrb[10].mxu1 }
 0x282   : > { %v2359_v52 = vpop.f32.mrb[11].mxu1 }
 0x2bd   : > { %v2395_v53 = vpop.f32.mrb[12].mxu0 }
 0x2be   : > { %v2396_v13 = vadd.f32 %v2395_v53, %v5720_v56  ;;  %v2397_v17 = vpop.f32.mrb[13].mxu0 }
 0x2bf   : > { %v2398_v27 = vadd.f32 %v2397_v17, %v5722_v58  ;;  %v2399_v22 = vpop.f32.mrb[14].mxu0  ;;  %v2436_v54 = vpop.f32.mrb[12].mxu1 }
 0x2c0   : > { %v2400_v38 = vpop.f32.mrb[15].mxu0  ;;  %v2437_v55 = vadd.f32 %v2436_v54, %v2396_v13  ;;  %v2438_v28 = vpop.f32.mrb[13].mxu1 }
 0x2c1   : > { %v2439_v40 = vadd.f32 %v2438_v28, %v2398_v27  ;;  %v2440_v57 = vpop.f32.mrb[14].mxu1 }
 0x2c2   : > { %v2441_v59 = vpop.f32.mrb[15].mxu1 }
 0x2fd   : > { %v3258_v37 = vpop.f32.mrb[16].mxu0 }
 0x2fe   : > { %v3260_v62 = vpop.f32.mrb[17].mxu0 }
 0x2ff   : > { %v3262_v56 = vpop.f32.mrb[18].mxu0  ;;  %v3299_v0 = vpop.f32.mrb[16].mxu1 }
 0x300   : > { %v3263_v2 = vpop.f32.mrb[19].mxu0  ;;  %v3300_v58 = vadd.f32 %v3299_v0, %v3258_v37  ;;  %v3301_v44 = vpop.f32.mrb[17].mxu1 }
 0x301   : > { %v3302_v7 = vadd.f32 %v3301_v44, %v3260_v62  ;;  %v3303_v9 = vpop.f32.mrb[18].mxu1 }
 0x302   : > { %v3388_v11 = vadd.f32 %v3300_v58, %v2355_v47  ;;  %v3304_v1 = vpop.f32.mrb[19].mxu1 }
 0x303   : > { %v3389_v10 = vadd.f32 %v3302_v7, %v2357_v50 }
 0x304   : > { %v3414_v12 = vadd.f32 %v3397_v5, %v3388_v11 }
 0x305   : > { %v3415_v14 = vadd.f32 %v3401_v8, %v3389_v10 }
 0x307   : > { %v4051_v15 = vpack.c.bf16 %v3415_v14, %v3414_v12 }
 0x309   : > { %3434 = vst [vmem:[%s384_s4] sm:$0xff] %v4051_v15 }
 0x33d   : > { %v3340_v33 = vpop.f32.mrb[20].mxu0 }
 0x33e   : > { %v3342_v16 = vpop.f32.mrb[21].mxu0 }
 0x33f   : > { %v3344_v20 = vpop.f32.mrb[22].mxu0  ;;  %v3381_v21 = vpop.f32.mrb[20].mxu1 }
 0x340   : > { %v3345_v23 = vpop.f32.mrb[23].mxu0  ;;  %v3382_v24 = vadd.f32 %v3381_v21, %v3340_v33  ;;  %v3383_v18 = vpop.f32.mrb[21].mxu1 }
 0x341   : > { %v3384_v30 = vadd.f32 %v3383_v18, %v3342_v16  ;;  %v3385_v29 = vpop.f32.mrb[22].mxu1 }
 0x342   : > { %v3390_v32 = vadd.f32 %v3382_v24, %v2437_v55  ;;  %v3386_v34 = vpop.f32.mrb[23].mxu1 }
 0x343   : > { %v3391_v49 = vadd.f32 %v3384_v30, %v2439_v40 }
 0x344   : > { %v3416_v3 = vadd.f32 %v3405_v26, %v3390_v32 }
 0x345   : > { %v3417_v35 = vadd.f32 %v3409_v31, %v3391_v49 }
 0x347   : > { %v4052_v36 = vpack.c.bf16 %v3417_v35, %v3416_v3 }
 0x349   : > { %3435 = vst [vmem:[%s384_s4 + $0x8] sm:$0xff] %v4052_v36 }
 0x34a   : > { %4960 = shalt.err (!%p4957_p3)
}
 0x34b   : > { %s4961_s11 = scalar_lea.hbm %s5742_s7, 256  ;;  %s4965_s24 = scalar_lea.hbm %s5908_s17, 1024 }
 0x34c   : > { %p4962_p12 = scmp.ne.s32.totalorder %s5742_s7, %s4961_s11  ;;  %p4966_p1 = scmp.lt.u32.totalorder %s5742_s7, %s5908_s17 }
 0x34d   : > { %p4967_p13 = scmp.lt.u32.totalorder %s4965_s24, %s4961_s11  ;;  %p4969_p5 = scmp.lt.u32.totalorder %s4961_s11, %s5742_s7 }
 0x34e   : > { %p4963_p4 = pnand %p4962_p12, %p5909_p9 }
 0x34f   : > { %p4968_p0 = por %p4967_p13, %p4966_p1 }
 0x350   : > { %p4964_p6 = pneg %p4963_p4 }
 0x351   : > { %p4970_p10 = por %p4969_p5, %p4968_p0 }
 0x353   : > { %p4971_p8 = pnand %p4970_p10, %p4964_p6 }
 0x355   : > { %4974 = shalt.err (!%p4971_p8)
}
 0x356   : > { %4067 = dma.vmem_to_hbm [thread:$0]  (%p5909_p9), %s5744_s21, 256, %s5742_s7, %s3437_s8  }
 0x357 PF: > { %s5910_s22 = sld [smem:[#allocation18_spill]]  ;;  %p4095_p7 = scmp.ge.s32.totalorder %s5109_s6, 2 }
 0x358   : > { %p5911_p2 = scmp.ne.s32.totalorder %s5865_s16, 0 }
 0x35a   : > { %p4087_p11 = pnand %p4095_p7, %p5911_p2 }
 0x35d   : > { %s3465_s28 = sand.u32 1, %s5910_s22  }
 0x35e   : > { %s3466_s18 = scalar_lea.sflag [#allocation4], %s3465_s28 }
 0x35f   : > { %5048 = dma.done.wait (!%p4087_p11), %s3466_s18, 256  }
 0x360   : > { %5050 = vsyncadd (!%p4087_p11), %s3466_s18, 4294967040  ;;  %s25_s6 = sadd.s32 1, %s5109_s6   ;;  %s5913_s21 = sld [smem:[#allocation19_spill]] }
 0x361   : > { %p5774_p3 = scmp.ge.s32.totalorder %s25_s6, 6   ;;  %s5914_s18 = smov %s5061_s19 }
 0x362   : > { %s5915_s19 = smov %s5065_s20  ;;  %s5916_s20 = smov %s5469_s1 }
 0x363   : > { %s5917_s22 = smov %s5077_s23  ;;  %s5918_s23 = smov %s5407_s15 }
 0x364   : > { %s5919_s24 = smov %s5085_s25  ;;  %s5920_s25 = smov %s5089_s26 }
 0x365   : > { %s5921_s26 = smov %s5402_s5  ;;  %s5922_s27 = smov %s5101_s29 }
 0x366   : > { %s5923_s28 = smov %s5105_s30  ;;  %s5924_s29 = smov %s5927_s9 }
 0x367   : > { %s5925_s30 = smov %s5931_s12  ;;  %24 = sbr.rel (!%p5774_p3) target bundleno = 20 (0x14), region = 119 }
 0x36e   :  { %3471 = vsyncpa [#allocation3], 1 }
 0x36f   :  { %3473 = vsyncpa [#allocation3 + $0x1], 1 }
 0x370   :  { %3474 = vsyncpa [#allocation6], 1 }
 0x371   :  { %3476 = vsyncpa [#allocation6 + $0x1], 1 }
 0x372   :  { %3477 = vsyncpa [#allocation9], 1 }
 0x373   :  { %3478 = vsyncpa [#allocation4], 1 }
 0x374   :  { %3480 = vsyncpa [#allocation4 + $0x1], 1 }

</bundles_post_ra>
